<compile_context>
chip_gen: v6e
topology: v6e:2x2x1
jax: 0.10.0
libtpu: 0.0.40
codegen_flags: <defaults>
</compile_context>

<pallas_src>
from functools import partial

import numpy as np
import jax
import jax.numpy as jnp
from jax import lax
from jax.experimental import pallas as pl
from jax.experimental.pallas import tpu as pltpu

LOG_EPS = 1e-12     # MelTransform eps
NORM_EPS = 1e-5     # Norm eps (mel_norm_eps)

_TIME_TILE_CAP = 2048   # keeps double-buffered working set well under 16 MiB


# ---------------------------------------------------------------------------
# Deterministic mel filterbank construction (MelTransform.__init__ equivalent)
# ---------------------------------------------------------------------------
def _hz2mel(f):
    return 2595.0 * np.log10(1.0 + np.asarray(f, dtype=np.float64) / 700.0)


def _mel2hz(m):
    return 700.0 * (10.0 ** (np.asarray(m, dtype=np.float64) / 2595.0) - 1.0)


def get_fbanks(n_mels, fft_length, sample_rate, fmin=50.0, fmax=None):
    """Triangular mel filterbank, shape (n_mels, fft_length // 2 + 1)."""
    if fmax is None:
        fmax = sample_rate / 2.0
    n_freqs = fft_length // 2 + 1
    mel_pts = np.linspace(_hz2mel(fmin), _hz2mel(fmax), n_mels + 2)
    hz_pts = _mel2hz(mel_pts)
    bin_freqs = np.linspace(0.0, sample_rate / 2.0, n_freqs)
    fbanks = np.zeros((n_mels, n_freqs), dtype=np.float64)
    for m in range(n_mels):
        left, center, right = hz_pts[m], hz_pts[m + 1], hz_pts[m + 2]
        up = (bin_freqs - left) / max(center - left, 1e-12)
        down = (right - bin_freqs) / max(right - center, 1e-12)
        fbanks[m] = np.maximum(0.0, np.minimum(up, down))
    return fbanks.astype(np.float32)


def make_normalized_fbanks(n_mels, sample_rate, fft_length, fmin=50.0, fmax=None):
    """Row-normalized fbanks, transposed to (F, M) as stored in MelTransform."""
    fb = get_fbanks(n_mels, fft_length, sample_rate, fmin, fmax)
    fb = fb / (fb.sum(axis=-1, keepdims=True) + 1e-6)
    return np.ascontiguousarray(fb.T).astype(np.float32)  # (F, M)


# ---------------------------------------------------------------------------
# Tiling helpers
# ---------------------------------------------------------------------------
def _pick_time_tile(T, cap=_TIME_TILE_CAP):
    """Time tile: multiple of 128 when possible, capped for VMEM safety."""
    if T <= 128:
        return T                                  # single full-extent block
    if T % 128 == 0:
        best, t = 128, 128
        top = min(T, cap)
        while t <= top:
            if T % t == 0:
                best = t
            t += 128
        return best
    # T not a multiple of 128: multiple-of-128 tile <= T, masked tail tile.
    return min(cap, (T // 128) * 128)


def _pick_chunk(tile_t):
    """Sub-tile for the in-kernel square+matmul loop."""
    for c in (256, 128):
        if tile_t > c and tile_t % c == 0:
            return c
    return tile_t


# ---------------------------------------------------------------------------
# Pass 1: interleaved power -> mel (bf16 MXU) -> log, written lane-dense
#         (M, Tt), plus per-(batch, channel) shifted statistics.
# ---------------------------------------------------------------------------
def _logmel_stats_kernel(x_ref, fb_ref, logmel_ref, stats_ref,
                         *, t_total, tile_t, chunk_t):
    """One (channel, batch, time-tile) grid step.

    x_ref:      (Tt, K)   interleaved re/im STFT values of one (b, c) slice (f32)
    fb_ref:     (M, K)    mel filterbank with duplicated interleaved cols (bf16)
    logmel_ref: (M, Tt)   un-normalized log-mel tile, time on lanes (f32)
    stats_ref:  (M, 3)    [shift, sum(x-shift), sum((x-shift)^2)] per mel bin,
                          accumulated across the time-tile axis for THIS (b, c)
    """
    t = pl.program_id(2)
    n_chunks = tile_t // chunk_t
    need_mask = (t_total % tile_t) != 0          # static (tail tile is partial)

    fb = fb_ref[...]                              # (M, K) bf16, VMEM-resident

    def chunk_logmel(i):                          # i: static python int
        y = x_ref[i * chunk_t:(i + 1) * chunk_t, :]          # (ck, K) f32
        y2 = (y * y).astype(jnp.bfloat16)                    # square in f32, cast
        mel = lax.dot_general(
            fb, y2,
            dimension_numbers=(((1,), (1,)), ((), ())),      # contract K
            preferred_element_type=jnp.float32)              # (M, ck) f32 acc
        return jnp.log(mel + LOG_EPS)

    def masked(centered, i):
        if not need_mask:
            return centered
        # Exclude columns past the true sequence length from the statistics.
        col = i * chunk_t + lax.broadcasted_iota(jnp.int32, centered.shape, 1)
        valid = (t * tile_t + col) < t_total
        return jnp.where(valid, centered, 0.0)   # where, not mul: kills NaN/Inf

    # Chunk 0: also provides the per-(b, c) shift (mean of the first, fully
    # valid chunk of tile 0) so accumulated sums stay small and the
    # E[x^2]-E[x]^2 cancellation is avoided.
    lm0 = chunk_logmel(0)
    logmel_ref[:, 0:chunk_t] = lm0

    @pl.when(t == 0)
    def _init():
        stats_ref[...] = jnp.zeros_like(stats_ref)
        stats_ref[:, 0:1] = jnp.mean(lm0, axis=1, keepdims=True)

    shift = stats_ref[:, 0:1]                     # (M, 1)
    c0 = masked(lm0 - shift, 0)
    acc_s = jnp.sum(c0, axis=1, keepdims=True)
    acc_ss = jnp.sum(c0 * c0, axis=1, keepdims=True)

    # Remaining chunks: static unrolled loop; each (M, chunk_t) slab is stored
    # immediately so the squared temporary never grows beyond one chunk.
    for i in range(1, n_chunks):
        lm = chunk_logmel(i)
        logmel_ref[:, i * chunk_t:(i + 1) * chunk_t] = lm
        c = masked(lm - shift, i)
        acc_s = acc_s + jnp.sum(c, axis=1, keepdims=True)
        acc_ss = acc_ss + jnp.sum(c * c, axis=1, keepdims=True)

    stats_ref[:, 1:2] += acc_s
    stats_ref[:, 2:3] += acc_ss


# ---------------------------------------------------------------------------
# Pass 2: out = logmel * scale + bias  (scale/bias precomputed per (c, mel)).
# ---------------------------------------------------------------------------
def _normalize_kernel(logmel_ref, scale_ref, bias_ref, o_ref):
    o_ref[...] = logmel_ref[...] * scale_ref[...] + bias_ref[...]


# ---------------------------------------------------------------------------
# Jitted implementation
# ---------------------------------------------------------------------------
@partial(jax.jit, static_argnames=("tile_t", "chunk_t"))
def _nlme_impl(x, fb, *, tile_t, chunk_t):
    B, C, T, F, two = x.shape
    M, K = fb.shape                                   # K <= 2F (maybe truncated)
    x2 = x.reshape(B, C, T, two * F)                  # free trailing-dim merge

    nT = pl.cdiv(T, tile_t)
    grid = (C, B, nT)

    kern = partial(_logmel_stats_kernel, t_total=T, tile_t=tile_t, chunk_t=chunk_t)

    cost1 = pl.CostEstimate(
        flops=2 * B * C * T * M * K + B * C * T * K,
        transcendentals=B * C * T * M,
        bytes_accessed=(B * C * T * (two * F + M) + B * C * M * 3 + M * K) * 4,
    )

    # NOTE: pipeline_mode=pl.Buffered(3) on the x spec and an explicit
    # vmem_limit_bytes are optional tuning knobs; defaults already fit.
    logmel, stats = pl.pallas_call(
        kern,
        grid=grid,
        in_specs=[
            pl.BlockSpec((None, None, tile_t, K), lambda c, b, t: (b, c, t, 0)),
            pl.BlockSpec((M, K), lambda c, b, t: (0, 0)),
        ],
        out_specs=[
            pl.BlockSpec((None, None, M, tile_t), lambda c, b, t: (b, c, 0, t)),
            pl.BlockSpec((None, None, M, 3), lambda c, b, t: (b, c, 0, 0)),
        ],
        out_shape=[
            jax.ShapeDtypeStruct((B, C, M, T), jnp.float32),
            jax.ShapeDtypeStruct((B, C, M, 3), jnp.float32),
        ],
        compiler_params=pltpu.CompilerParams(
            # Stats are per-(b, c) partials -> only the time-tile axis is an
            # accumulation ("arbitrary") axis; c and b shard across cores.
            dimension_semantics=("parallel", "parallel", "arbitrary")),
        cost_estimate=cost1,
    )(x2, fb)

    # Combine per-(b, c) partial statistics (tiny (B, C, M) arrays, plain JAX)
    # into per-(c, mel) scale/bias. Every b slot covers exactly T valid frames.
    shift = stats[..., 0]
    s = stats[..., 1]
    ss = stats[..., 2]
    inv_t = 1.0 / float(T)
    mean_b = shift + s * inv_t
    var_b = jnp.maximum(ss * inv_t - (s * inv_t) ** 2, 0.0)
    mean = jnp.mean(mean_b, axis=0)                            # (C, M)
    var = jnp.mean(var_b + (mean_b - mean) ** 2, axis=0)       # (C, M)
    inv_std = lax.rsqrt(var + NORM_EPS)
    scale = inv_std[..., None].astype(jnp.float32)             # (C, M, 1)
    bias = (-mean * inv_std)[..., None].astype(jnp.float32)    # (C, M, 1)

    cost2 = pl.CostEstimate(
        flops=2 * B * C * T * M,
        transcendentals=0,
        bytes_accessed=2 * B * C * T * M * 4,
    )

    out = pl.pallas_call(
        _normalize_kernel,
        grid=grid,
        in_specs=[
            pl.BlockSpec((None, None, M, tile_t), lambda c, b, t: (b, c, 0, t)),
            pl.BlockSpec((None, M, 1), lambda c, b, t: (c, 0, 0)),
            pl.BlockSpec((None, M, 1), lambda c, b, t: (c, 0, 0)),
        ],
        out_specs=pl.BlockSpec((None, None, M, tile_t), lambda c, b, t: (b, c, 0, t)),
        out_shape=jax.ShapeDtypeStruct((B, C, M, T), jnp.float32),
        input_output_aliases={0: 0},   # normalize the log-mel buffer in place
        compiler_params=pltpu.CompilerParams(
            dimension_semantics=("parallel", "parallel", "parallel")),
        cost_estimate=cost2,
    )(logmel, scale, bias)

    return out


# ---------------------------------------------------------------------------
# Public wrapper (host-side filterbank prep; fbanks must be concrete)
# ---------------------------------------------------------------------------
def normalized_log_mel_extractor(x, fbanks):
    """x: (B, C, T, F, 2) float32 STFT, fbanks: (F, M) float32 -> (B, C, M, T)."""
    B, C, T, F, two = x.shape
    assert two == 2
    fb_np = np.asarray(fbanks, dtype=np.float32)        # tiny, host-side
    assert fb_np.shape[0] == F
    M = fb_np.shape[1]

    # ReLU + interleaved column duplication (fb2[:, 2f] = fb2[:, 2f+1] = relu(fb)[f]).
    fb2 = np.ascontiguousarray(np.repeat(np.maximum(fb_np, 0.0), 2, axis=0).T)  # (M, 2F)

    # Exact lane truncation: drop trailing columns down to a multiple of 128
    # only if their filter weights are exactly zero (true for the Nyquist bin
    # under the default fmax = sample_rate/2).  Requires no copy of the input.
    K = fb2.shape[1]
    k_aligned = (K // 128) * 128
    if 128 <= k_aligned < K and np.all(fb2[:, k_aligned:] == 0.0):
        fb2 = fb2[:, :k_aligned]

    fb_bf16 = jnp.asarray(fb2, dtype=jnp.bfloat16)      # bf16 MXU operand

    tile_t = _pick_time_tile(T)
    chunk_t = _pick_chunk(tile_t)
    return _nlme_impl(x, fb_bf16, tile_t=tile_t, chunk_t=chunk_t)

# TODO(synk): seq_len masking in Norm and the optional train-time augmentations
# (warping, blur, deltas, time/mel masking, noise, resampler) are disabled
# under the default config and are not implemented here.


# ---------------------------------------------------------------------------
# Pure-JAX reference for verification
# ---------------------------------------------------------------------------
def reference(x, fbanks):
    power = jnp.sum(x ** 2, axis=-1)                       # (B, C, T, F)
    mel = power @ jnp.maximum(fbanks, 0.0)                 # (B, C, T, M)
    logmel = jnp.log(mel + LOG_EPS)
    z = jnp.transpose(logmel, (0, 1, 3, 2))                # (B, C, M, T)
    mean = jnp.mean(z, axis=(0, 3), keepdims=True)
    var = jnp.mean((z - mean) ** 2, axis=(0, 3), keepdims=True)
    return (z - mean) / jnp.sqrt(var + NORM_EPS)


if __name__ == "__main__":
    # Small shapes consistent with the module: STFT-like input (B, C, T, F, 2).
    # T = 520 (not a multiple of 128) exercises the bigger time tiles, the
    # masked tail tile, and the per-batch partial-statistics combination.
    B, C, T = 2, 2, 520
    n_mels, sample_rate, fft_length = 32, 16000, 256
    F = fft_length // 2 + 1  # 129 -> interleaved K = 258, truncated to 256

    fbanks = make_normalized_fbanks(n_mels, sample_rate, fft_length, fmin=50.0)  # (F, M)

    key = jax.random.PRNGKey(0)
    x = jax.random.normal(key, (B, C, T, F, 2), dtype=jnp.float32)

    y = jax.block_until_ready(normalized_log_mel_extractor(x, fbanks))
    assert y.shape == (B, C, n_mels, T), y.shape

    ref = reference(x, jnp.asarray(fbanks))
    # Tolerance accounts for bf16 MXU operands (~1e-3 relative mel error after
    # log + per-(c, mel) normalization); reference is full f32.
    np.testing.assert_allclose(np.asarray(y), np.asarray(ref), rtol=1e-2, atol=2e-2)
    print("KERNEL_OK")
</pallas_src>

<mosaic_0001>
module attributes {stable_mosaic.version = 11 : i64} {
  func.func @_logmel_stats_kernel(%arg0: i32, %arg1: i32, %arg2: i32, %arg3: memref<1x1x512x258xf32, #tpu.memory_space<vmem>>, %arg4: memref<32x258xbf16, #tpu.memory_space<vmem>>, %arg5: memref<1x1x32x512xf32, #tpu.memory_space<vmem>>, %arg6: memref<1x1x32x3xf32, #tpu.memory_space<vmem>>) attributes {dimension_semantics = [#tpu.dimension_semantics<parallel>, #tpu.dimension_semantics<parallel>, #tpu.dimension_semantics<arbitrary>], iteration_bounds = array<i64: 2, 2, 2>, scalar_prefetch = 0 : i64, scratch_operands = 0 : i64, tpu.core_type = #tpu.core_type<tc>, window_params = [{transform_indices = @transform_0, window_bounds = array<i64: 1, 1, 512, 258>}, {pipeline_mode = #tpu.pipeline_mode<synchronous>, transform_indices = @transform_1, window_bounds = array<i64: 32, 258>}, {transform_indices = @transform_2, window_bounds = array<i64: 1, 1, 32, 512>}, {transform_indices = @transform_3, window_bounds = array<i64: 1, 1, 32, 3>}]} {
    %c0 = arith.constant 0 : index
    %c0_0 = arith.constant 0 : index
    %0 = vector.load %arg4[%c0, %c0_0] : memref<32x258xbf16, #tpu.memory_space<vmem>>, vector<32x258xbf16>
    %c0_1 = arith.constant 0 : index
    %c0_2 = arith.constant 0 : index
    %c0_3 = arith.constant 0 : index
    %c0_4 = arith.constant 0 : index
    %1 = vector.load %arg3[%c0_1, %c0_2, %c0_3, %c0_4] : memref<1x1x512x258xf32, #tpu.memory_space<vmem>>, vector<1x1x256x258xf32>
    %2 = vector.shape_cast %1 : vector<1x1x256x258xf32> to vector<256x258xf32>
    %3 = arith.mulf %2, %2 : vector<256x258xf32>
    %4 = arith.truncf %3 : vector<256x258xf32> to vector<256x258xbf16>
    %cst = arith.constant dense<0.000000e+00> : vector<32x256xf32>
    %5 = tpu.matmul %0, %4, %cst {dimension_numbers = #tpu.dot_dimension_numbers<[1], [1], [0], [0], [0, 0, 1, 0], [], []>} : vector<32x258xbf16>, vector<256x258xbf16>, vector<32x256xf32> -> vector<32x256xf32>
    %cst_5 = arith.constant 9.99999996E-13 : f32
    %6 = vector.broadcast %cst_5 : f32 to vector<32x256xf32>
    %7 = arith.addf %5, %6 : vector<32x256xf32>
    %8 = math.log %7 : vector<32x256xf32>
    %c0_6 = arith.constant 0 : index
    %c0_7 = arith.constant 0 : index
    %c0_8 = arith.constant 0 : index
    %c0_9 = arith.constant 0 : index
    %9 = vector.load %arg5[%c0_6, %c0_7, %c0_8, %c0_9] : memref<1x1x32x512xf32, #tpu.memory_space<vmem>>, vector<1x1x32x256xf32>
    %10 = vector.shape_cast %9 : vector<1x1x32x256xf32> to vector<32x256xf32>
    %11 = vector.shape_cast %8 : vector<32x256xf32> to vector<1x1x32x256xf32>
    tpu.vector_store %arg5[%c0_6, %c0_7, %c0_8, %c0_9], %11 {strides = array<i32>} : memref<1x1x32x512xf32, #tpu.memory_space<vmem>>, vector<1x1x32x256xf32>,
    %c0_i32 = arith.constant 0 : i32
    %12 = arith.cmpi eq, %arg2, %c0_i32 : i32
    %13 = arith.extui %12 : i1 to i32
    %c0_i32_10 = arith.constant 0 : i32
    %14 = arith.cmpi ne, %13, %c0_i32_10 : i32
    scf.if %14 {
      %cst_47 = arith.constant 0.000000e+00 : f32
      %76 = vector.broadcast %cst_47 : f32 to vector<32x3xf32>
      %c0_48 = arith.constant 0 : index
      %c0_49 = arith.constant 0 : index
      %c0_50 = arith.constant 0 : index
      %c0_51 = arith.constant 0 : index
      %77 = vector.load %arg6[%c0_48, %c0_49, %c0_50, %c0_51] : memref<1x1x32x3xf32, #tpu.memory_space<vmem>>, vector<1x1x32x3xf32>
      %78 = vector.shape_cast %77 : vector<1x1x32x3xf32> to vector<32x3xf32>
      %79 = vector.shape_cast %76 : vector<32x3xf32> to vector<1x1x32x3xf32>
      tpu.vector_store %arg6[%c0_48, %c0_49, %c0_50, %c0_51], %79 {strides = array<i32>} : memref<1x1x32x3xf32, #tpu.memory_space<vmem>>, vector<1x1x32x3xf32>,
      %cst_52 = arith.constant dense<0.000000e+00> : vector<32xf32>
      %80 = vector.multi_reduction <add>, %8, %cst_52 [1] : vector<32x256xf32> to vector<32xf32>
      %81 = vector.shape_cast %80 : vector<32xf32> to vector<32x1xf32>
      %cst_53 = arith.constant 2.560000e+02 : f32
      %82 = vector.broadcast %cst_53 : f32 to vector<32x1xf32>
      %83 = arith.divf %81, %82 : vector<32x1xf32>
      %c0_54 = arith.constant 0 : index
      %c0_55 = arith.constant 0 : index
      %c0_56 = arith.constant 0 : index
      %c0_57 = arith.constant 0 : index
      %84 = vector.load %arg6[%c0_54, %c0_55, %c0_56, %c0_57] : memref<1x1x32x3xf32, #tpu.memory_space<vmem>>, vector<1x1x32x1xf32>
      %85 = vector.shape_cast %84 : vector<1x1x32x1xf32> to vector<32x1xf32>
      %86 = vector.shape_cast %83 : vector<32x1xf32> to vector<1x1x32x1xf32>
      tpu.vector_store %arg6[%c0_54, %c0_55, %c0_56, %c0_57], %86 {strides = array<i32>} : memref<1x1x32x3xf32, #tpu.memory_space<vmem>>, vector<1x1x32x1xf32>,
    } else {
    }
    %c0_11 = arith.constant 0 : index
    %c0_12 = arith.constant 0 : index
    %c0_13 = arith.constant 0 : index
    %c0_14 = arith.constant 0 : index
    %15 = vector.load %arg6[%c0_11, %c0_12, %c0_13, %c0_14] : memref<1x1x32x3xf32, #tpu.memory_space<vmem>>, vector<1x1x32x1xf32>
    %16 = vector.shape_cast %15 : vector<1x1x32x1xf32> to vector<32x1xf32>
    %17 = vector.broadcast %16 : vector<32x1xf32> to vector<32x256xf32>
    %18 = arith.subf %8, %17 : vector<32x256xf32>
    %19 = tpu.iota {dimensions = array<i32: 1>} : vector<32x256xi32>
    %c0_i32_15 = arith.constant 0 : i32
    %20 = vector.broadcast %c0_i32_15 : i32 to vector<32x256xi32>
    %21 = arith.addi %20, %19 : vector<32x256xi32>
    %c512_i32 = arith.constant 512 : i32
    %22 = arith.muli %arg2, %c512_i32 : i32
    %23 = vector.broadcast %22 : i32 to vector<32x256xi32>
    %24 = arith.addi %23, %21 : vector<32x256xi32>
    %c520_i32 = arith.constant 520 : i32
    %25 = vector.broadcast %c520_i32 : i32 to vector<32x256xi32>
    %26 = arith.cmpi slt, %24, %25 : vector<32x256xi32>
    %cst_16 = arith.constant 0.000000e+00 : f32
    %27 = vector.broadcast %cst_16 : f32 to vector<32x256xf32>
    %28 = arith.select %26, %18, %27 : vector<32x256xi1>, vector<32x256xf32>
    %cst_17 = arith.constant dense<0.000000e+00> : vector<32xf32>
    %29 = vector.multi_reduction <add>, %28, %cst_17 [1] : vector<32x256xf32> to vector<32xf32>
    %30 = vector.shape_cast %29 : vector<32xf32> to vector<32x1xf32>
    %31 = arith.mulf %28, %28 : vector<32x256xf32>
    %cst_18 = arith.constant dense<0.000000e+00> : vector<32xf32>
    %32 = vector.multi_reduction <add>, %31, %cst_18 [1] : vector<32x256xf32> to vector<32xf32>
    %33 = vector.shape_cast %32 : vector<32xf32> to vector<32x1xf32>
    %c0_19 = arith.constant 0 : index
    %c0_20 = arith.constant 0 : index
    %c256 = arith.constant 256 : index
    %c0_21 = arith.constant 0 : index
    %34 = vector.load %arg3[%c0_19, %c0_20, %c256, %c0_21] : memref<1x1x512x258xf32, #tpu.memory_space<vmem>>, vector<1x1x256x258xf32>
    %35 = vector.shape_cast %34 : vector<1x1x256x258xf32> to vector<256x258xf32>
    %36 = arith.mulf %35, %35 : vector<256x258xf32>
    %37 = arith.truncf %36 : vector<256x258xf32> to vector<256x258xbf16>
    %cst_22 = arith.constant dense<0.000000e+00> : vector<32x256xf32>
    %38 = tpu.matmul %0, %37, %cst_22 {dimension_numbers = #tpu.dot_dimension_numbers<[1], [1], [0], [0], [0, 0, 1, 0], [], []>} : vector<32x258xbf16>, vector<256x258xbf16>, vector<32x256xf32> -> vector<32x256xf32>
    %cst_23 = arith.constant 9.99999996E-13 : f32
    %39 = vector.broadcast %cst_23 : f32 to vector<32x256xf32>
    %40 = arith.addf %38, %39 : vector<32x256xf32>
    %41 = math.log %40 : vector<32x256xf32>
    %c0_24 = arith.constant 0 : index
    %c0_25 = arith.constant 0 : index
    %c0_26 = arith.constant 0 : index
    %c256_27 = arith.constant 256 : index
    %42 = vector.load %arg5[%c0_24, %c0_25, %c0_26, %c256_27] : memref<1x1x32x512xf32, #tpu.memory_space<vmem>>, vector<1x1x32x256xf32>
    %43 = vector.shape_cast %42 : vector<1x1x32x256xf32> to vector<32x256xf32>
    %44 = vector.shape_cast %41 : vector<32x256xf32> to vector<1x1x32x256xf32>
    tpu.vector_store %arg5[%c0_24, %c0_25, %c0_26, %c256_27], %44 {strides = array<i32>} : memref<1x1x32x512xf32, #tpu.memory_space<vmem>>, vector<1x1x32x256xf32>,
    %45 = vector.broadcast %16 : vector<32x1xf32> to vector<32x256xf32>
    %46 = arith.subf %41, %45 : vector<32x256xf32>
    %47 = tpu.iota {dimensions = array<i32: 1>} : vector<32x256xi32>
    %c256_i32 = arith.constant 256 : i32
    %48 = vector.broadcast %c256_i32 : i32 to vector<32x256xi32>
    %49 = arith.addi %48, %47 : vector<32x256xi32>
    %c512_i32_28 = arith.constant 512 : i32
    %50 = arith.muli %arg2, %c512_i32_28 : i32
    %51 = vector.broadcast %50 : i32 to vector<32x256xi32>
    %52 = arith.addi %51, %49 : vector<32x256xi32>
    %c520_i32_29 = arith.constant 520 : i32
    %53 = vector.broadcast %c520_i32_29 : i32 to vector<32x256xi32>
    %54 = arith.cmpi slt, %52, %53 : vector<32x256xi32>
    %cst_30 = arith.constant 0.000000e+00 : f32
    %55 = vector.broadcast %cst_30 : f32 to vector<32x256xf32>
    %56 = arith.select %54, %46, %55 : vector<32x256xi1>, vector<32x256xf32>
    %cst_31 = arith.constant dense<0.000000e+00> : vector<32xf32>
    %57 = vector.multi_reduction <add>, %56, %cst_31 [1] : vector<32x256xf32> to vector<32xf32>
    %58 = vector.shape_cast %57 : vector<32xf32> to vector<32x1xf32>
    %59 = arith.addf %30, %58 : vector<32x1xf32>
    %60 = arith.mulf %56, %56 : vector<32x256xf32>
    %cst_32 = arith.constant dense<0.000000e+00> : vector<32xf32>
    %61 = vector.multi_reduction <add>, %60, %cst_32 [1] : vector<32x256xf32> to vector<32xf32>
    %62 = vector.shape_cast %61 : vector<32xf32> to vector<32x1xf32>
    %63 = arith.addf %33, %62 : vector<32x1xf32>
    %c0_33 = arith.constant 0 : index
    %c0_34 = arith.constant 0 : index
    %c0_35 = arith.constant 0 : index
    %c1 = arith.constant 1 : index
    %64 = vector.load %arg6[%c0_33, %c0_34, %c0_35, %c1] : memref<1x1x32x3xf32, #tpu.memory_space<vmem>>, vector<1x1x32x1xf32>
    %65 = vector.shape_cast %64 : vector<1x1x32x1xf32> to vector<32x1xf32>
    %66 = arith.addf %65, %59 : vector<32x1xf32>
    %c0_36 = arith.constant 0 : index
    %c0_37 = arith.constant 0 : index
    %c0_38 = arith.constant 0 : index
    %c1_39 = arith.constant 1 : index
    %67 = vector.load %arg6[%c0_36, %c0_37, %c0_38, %c1_39] : memref<1x1x32x3xf32, #tpu.memory_space<vmem>>, vector<1x1x32x1xf32>
    %68 = vector.shape_cast %67 : vector<1x1x32x1xf32> to vector<32x1xf32>
    %69 = vector.shape_cast %66 : vector<32x1xf32> to vector<1x1x32x1xf32>
    tpu.vector_store %arg6[%c0_36, %c0_37, %c0_38, %c1_39], %69 {strides = array<i32>} : memref<1x1x32x3xf32, #tpu.memory_space<vmem>>, vector<1x1x32x1xf32>,
    %c0_40 = arith.constant 0 : index
    %c0_41 = arith.constant 0 : index
    %c0_42 = arith.constant 0 : index
    %c2 = arith.constant 2 : index
    %70 = vector.load %arg6[%c0_40, %c0_41, %c0_42, %c2] : memref<1x1x32x3xf32, #tpu.memory_space<vmem>>, vector<1x1x32x1xf32>
    %71 = vector.shape_cast %70 : vector<1x1x32x1xf32> to vector<32x1xf32>
    %72 = arith.addf %71, %63 : vector<32x1xf32>
    %c0_43 = arith.constant 0 : index
    %c0_44 = arith.constant 0 : index
    %c0_45 = arith.constant 0 : index
    %c2_46 = arith.constant 2 : index
    %73 = vector.load %arg6[%c0_43, %c0_44, %c0_45, %c2_46] : memref<1x1x32x3xf32, #tpu.memory_space<vmem>>, vector<1x1x32x1xf32>
    %74 = vector.shape_cast %73 : vector<1x1x32x1xf32> to vector<32x1xf32>
    %75 = vector.shape_cast %72 : vector<32x1xf32> to vector<1x1x32x1xf32>
    tpu.vector_store %arg6[%c0_43, %c0_44, %c0_45, %c2_46], %75 {strides = array<i32>} : memref<1x1x32x3xf32, #tpu.memory_space<vmem>>, vector<1x1x32x1xf32>,
    return
  }
  func.func @transform_0(%arg0: i32, %arg1: i32, %arg2: i32) -> (i32, i32, i32, i32) {
    %c0_i32 = arith.constant 0 : i32
    %c0_i32_0 = arith.constant 0 : i32
    return %arg1, %arg0, %arg2, %c0_i32 : i32, i32, i32, i32
  }
  func.func @transform_1(%arg0: i32, %arg1: i32, %arg2: i32) -> (i32, i32) {
    %c0_i32 = arith.constant 0 : i32
    %c0_i32_0 = arith.constant 0 : i32
    %c0_i32_1 = arith.constant 0 : i32
    return %c0_i32, %c0_i32_0 : i32, i32
  }
  func.func @transform_2(%arg0: i32, %arg1: i32, %arg2: i32) -> (i32, i32, i32, i32) {
    %c0_i32 = arith.constant 0 : i32
    %c0_i32_0 = arith.constant 0 : i32
    return %arg1, %arg0, %c0_i32, %arg2 : i32, i32, i32, i32
  }
  func.func @transform_3(%arg0: i32, %arg1: i32, %arg2: i32) -> (i32, i32, i32, i32) {
    %c0_i32 = arith.constant 0 : i32
    %c0_i32_0 = arith.constant 0 : i32
    %c0_i32_1 = arith.constant 0 : i32
    return %arg1, %arg0, %c0_i32, %c0_i32_0 : i32, i32, i32, i32
  }
}

module attributes {stable_mosaic.version = 11 : i64} {
  func.func @_normalize_kernel(%arg0: i32, %arg1: i32, %arg2: i32, %arg3: memref<1x1x32x512xf32, #tpu.memory_space<vmem>>, %arg4: memref<1x32x1xf32, #tpu.memory_space<vmem>>, %arg5: memref<1x32x1xf32, #tpu.memory_space<vmem>>, %arg6: memref<1x1x32x512xf32, #tpu.memory_space<vmem>>) attributes {dimension_semantics = [#tpu.dimension_semantics<parallel>, #tpu.dimension_semantics<parallel>, #tpu.dimension_semantics<parallel>], iteration_bounds = array<i64: 2, 2, 2>, scalar_prefetch = 0 : i64, scratch_operands = 0 : i64, tpu.core_type = #tpu.core_type<tc>, window_params = [{transform_indices = @transform_0, window_bounds = array<i64: 1, 1, 32, 512>}, {transform_indices = @transform_1, window_bounds = array<i64: 1, 32, 1>}, {transform_indices = @transform_2, window_bounds = array<i64: 1, 32, 1>}, {transform_indices = @transform_3, window_bounds = array<i64: 1, 1, 32, 512>}]} {
    %c0 = arith.constant 0 : index
    %c0_0 = arith.constant 0 : index
    %c0_1 = arith.constant 0 : index
    %c0_2 = arith.constant 0 : index
    %0 = vector.load %arg3[%c0, %c0_0, %c0_1, %c0_2] : memref<1x1x32x512xf32, #tpu.memory_space<vmem>>, vector<1x1x32x512xf32>
    %1 = vector.shape_cast %0 : vector<1x1x32x512xf32> to vector<32x512xf32>
    %c0_3 = arith.constant 0 : index
    %c0_4 = arith.constant 0 : index
    %c0_5 = arith.constant 0 : index
    %2 = vector.load %arg4[%c0_3, %c0_4, %c0_5] : memref<1x32x1xf32, #tpu.memory_space<vmem>>, vector<1x32x1xf32>
    %3 = vector.shape_cast %2 : vector<1x32x1xf32> to vector<32x1xf32>
    %4 = vector.broadcast %3 : vector<32x1xf32> to vector<32x512xf32>
    %5 = arith.mulf %1, %4 : vector<32x512xf32>
    %c0_6 = arith.constant 0 : index
    %c0_7 = arith.constant 0 : index
    %c0_8 = arith.constant 0 : index
    %6 = vector.load %arg5[%c0_6, %c0_7, %c0_8] : memref<1x32x1xf32, #tpu.memory_space<vmem>>, vector<1x32x1xf32>
    %7 = vector.shape_cast %6 : vector<1x32x1xf32> to vector<32x1xf32>
    %8 = vector.broadcast %7 : vector<32x1xf32> to vector<32x512xf32>
    %9 = arith.addf %5, %8 : vector<32x512xf32>
    %c0_9 = arith.constant 0 : index
    %c0_10 = arith.constant 0 : index
    %c0_11 = arith.constant 0 : index
    %c0_12 = arith.constant 0 : index
    %10 = vector.load %arg6[%c0_9, %c0_10, %c0_11, %c0_12] : memref<1x1x32x512xf32, #tpu.memory_space<vmem>>, vector<1x1x32x512xf32>
    %11 = vector.shape_cast %10 : vector<1x1x32x512xf32> to vector<32x512xf32>
    %12 = vector.shape_cast %9 : vector<32x512xf32> to vector<1x1x32x512xf32>
    tpu.vector_store %arg6[%c0_9, %c0_10, %c0_11, %c0_12], %12 {strides = array<i32>} : memref<1x1x32x512xf32, #tpu.memory_space<vmem>>, vector<1x1x32x512xf32>,
    return
  }
  func.func @transform_0(%arg0: i32, %arg1: i32, %arg2: i32) -> (i32, i32, i32, i32) {
    %c0_i32 = arith.constant 0 : i32
    %c0_i32_0 = arith.constant 0 : i32
    return %arg1, %arg0, %c0_i32, %arg2 : i32, i32, i32, i32
  }
  func.func @transform_1(%arg0: i32, %arg1: i32, %arg2: i32) -> (i32, i32, i32) {
    %c0_i32 = arith.constant 0 : i32
    %c0_i32_0 = arith.constant 0 : i32
    %c0_i32_1 = arith.constant 0 : i32
    return %arg0, %c0_i32, %c0_i32_0 : i32, i32, i32
  }
  func.func @transform_2(%arg0: i32, %arg1: i32, %arg2: i32) -> (i32, i32, i32) {
    %c0_i32 = arith.constant 0 : i32
    %c0_i32_0 = arith.constant 0 : i32
    %c0_i32_1 = arith.constant 0 : i32
    return %arg0, %c0_i32, %c0_i32_0 : i32, i32, i32
  }
  func.func @transform_3(%arg0: i32, %arg1: i32, %arg2: i32) -> (i32, i32, i32, i32) {
    %c0_i32 = arith.constant 0 : i32
    %c0_i32_0 = arith.constant 0 : i32
    return %arg1, %arg0, %c0_i32, %arg2 : i32, i32, i32, i32
  }
}

</mosaic_0001>

<bundles_post_ra>
// kernel: _nlme_impl.2
= control target key start
LH: loop header
LB: loop body
LE: loop exit
PB: predicated region body
PF: predicated region fallthrough
CT: control target
= control target key end

     0   :  { %9 = vsyncpa [#allocation3], 0  ;;  %s2537_s0 = inlined_call_operand.vmem [shape: f32[2,2,520,258], index: 0, kind: input, shape index: {}]   ;;  %s2538_s1 = inlined_call_operand.vmem [shape: bf16[32,258], index: 1, kind: input, shape index: {}]   ;;  %s2539_s2 = inlined_call_operand.hbm [shape: f32[2,2,32,520], index: 2, kind: output, shape index: {0}]   ;;  %s2540_s3 = inlined_call_operand.vmem [shape: f32[2,2,32,3], index: 3, kind: output, shape index: {1}]  }
   0x1   :  { %11 = vsyncpa [#allocation3 + $0x1], 0  ;;  %s1900_s12 = smov 0   ;;  %s1902_s13 = smov 0  }
   0x2   :  { %s1904_s14 = smov 0   ;;  %s1906_s15 = smov 0  }
   0x3   :  { %s1908_s16 = smov 0   ;;  %s1910_s17 = smov 0  }
   0x4   :  { %s1912_s18 = smov 0   ;;  %s1914_s19 = smov 0  }
   0x5   :  { %s1916_s20 = smov 0   ;;  %s1918_s21 = smov 0  }
   0x6 LB: > { %2548 = sst [smem:[#allocation5_spill]] %s1845_s14  ;;  %s1537_s22 = sadd.s32 4294967295, %s1873_s21   ;;  %s1873_s21 = sphi %s1918_s21, %s17_s21   ;;  %s1869_s20 = sphi %s1916_s20, %s2565_s20   ;;  %s1865_s19 = sphi %s1914_s19, %s2568_s19   ;;  %s1861_s18 = sphi %s1912_s18, %s2563_s18   ;;  %s1857_s17 = sphi %s1910_s17, %s2562_s17   ;;  %s1853_s16 = sphi %s1908_s16, %s2561_s16   ;;  %s1849_s15 = sphi %s1906_s15, %s2560_s15   ;;  %s1845_s14 = sphi %s1904_s14, %s2559_s14   ;;  %s1841_s13 = sphi %s1902_s13, %s2567_s13   ;;  %s1837_s12 = sphi %s1900_s12, %s2566_s12  }
   0x7   : > { %2549 = sst [smem:[#allocation6_spill]] %s1861_s18  ;;  %s29_s23 = sadd.s32 1, %s1861_s18 }
   0x8   : > { %2550 = sst [smem:[#allocation7_spill]] %s1865_s19  ;;  %p30_p0 = scmp.ge.s32.totalorder %s29_s23, 2 }
   0x9   : > { %2551 = sst [smem:[#allocation8_spill]] %s1869_s20  ;;  %s32_s24 = sadd.s32 1, %s1865_s19 }
   0xa   : > { %s1538_s25 = sadd.s32 4294967294, %s1873_s21   ;;  %p108_p1 = scmp.ne.s32.totalorder %s1845_s14, %s1841_s13 }
   0xb   : > { %s2570_s23 = smov (%p30_p0, %s29_s23), 0  ;;  %s2572_s24 = smov (!%p30_p0, %s32_s24), %s1865_s19 }
   0xc   : > { %2552 = sst [smem:[#allocation9_spill]] %s2570_s23  ;;  %s36_s26 = sadd.s32 1, %s1869_s20 }
   0xd   : > { %p109_p2 = scmp.eq.s32.totalorder %s1537_s22, 7  ;;  %p34_p3 = scmp.ge.s32.totalorder %s2572_s24, 2 }
   0xe   : > { %p114_p4 = scmp.ne.s32.totalorder %s1841_s13, %s1837_s12  ;;  %p115_p6 = scmp.eq.s32.totalorder %s1538_s25, 7 }
   0xf   : > { %p1962_p5 = por %p109_p2, %p108_p1  ;;  %s2574_s24 = smov (%p34_p3, %s2572_s24), 0 }
  0x10   : > { %2554 = sst [smem:[#allocation10_spill]] %s2574_s24  ;;  %s2576_s26 = smov (!%p34_p3, %s36_s26), %s1869_s20 }
  0x11   : > { %p1969_p7 = por %p115_p6, %p114_p4  ;;  %p38_p8 = scmp.ge.s32.totalorder %s2576_s26, 2 }
  0x12   : > { %p1541_p9 = scmp.ge.s32.totalorder %s1873_s21, 1  ;;  %s91_s29 = ssub.s32 %s1865_s19, %s2574_s24 }
  0x13   : > { %p192_p10 = scmp.lt.s32.totalorder %s1873_s21, 9  ;;  %s2578_s26 = smov (%p38_p8, %s2576_s26), 0 }
  0x14   : > { %2556 = sst [smem:[#allocation11_spill]] %s2578_s26  ;;  %s94_s30 = ssub.s32 %s1861_s18, %s2570_s23 }
  0x15   : > { %p193_p11 = pnand %p1541_p9, %p192_p10  ;;  %s92_s4 = ssub.s32 %s1869_s20, %s2578_s26 }
  0x16   : > { %s93_s5 = sor.u32 %s92_s4, %s91_s29  ;;  %s98_s7 = sadd.s32 1, %s1845_s14 }
  0x17   : > { %s95_s6 = sor.u32 %s94_s30, %s93_s5  ;;  %s1543_s9 = sshll.u32 (!%p193_p11), %s1849_s15, 6 }
  0x18   : > { %p96_p12 = scmp.eq.s32.totalorder %s95_s6, 0  ;;  %196 = sbr.rel (%p193_p11) target bundleno = 1097 (0x449), region = 28 }
  0x19   : > { %p245_p13 = scmp.lt.s32.totalorder (!%p193_p11), %s1853_s16, 1  ;;  %p247_p0 = scmp.lt.s32.totalorder (!%p193_p11), %s1857_s17, 1 }
  0x1a   : > { %s1985_s8 = scalar_select %p96_p12, %s1845_s14, %s98_s7  }
  0x1b   : > { %p249_p1 = scmp.lt.s32.totalorder (!%p193_p11), %s1543_s9, 64  ;;  %p1556_p2 = scmp.ne.s32.totalorder (!%p193_p11), %s1849_s15, 0 }
  0x1c   : > { %2557 = sst [smem:[#allocation12_spill]] %s1985_s8 }
  0x1d   : > { %s246_s10 = scalar_select %p245_p13, %s1853_s16, 1  ;;  %v2000_v0 = vld [vmem:[%s2538_s1 + $0x8] ss:$12 sps:$4 sm:$0xff]   ;;  %vm557_vm0 = vcmask 15360   ;;  %v2010_v1 = vld [vmem:[%s2538_s1 + $0x4] ss:$12 sps:$4 sm:$0xff]  }
  0x1e   : > { %s248_s11 = scalar_select %p247_p0, %s1857_s17, 1  ;;  %1588 = vmatprep.mubr.msk.bf16.mxu1 %vm557_vm0, %v2000_v0  ;;  %644 = vmatprep.mubr.bf16.mxu0 %v2010_v1 }
  0x1f   : > { %s2580_s9 = smov (!%p249_p1, %s1543_s9), 64  ;;  %s1546_s30 = sshll.u32 %s246_s10, 3 }
  0x20   : > { %s1629_s22 = smul.u32 195, %s248_s11  ;;  %s1545_s25 = sshll.u32 %s248_s11, 2 }
  0x21   : > { %s1628_s29 = smul.u32 3, %s2580_s9  ;;  %s275_s5 = sadd.s32 %s1546_s30, %s1545_s25 }
  0x22   : > { %s1630_s4 = smul.u32 390, %s246_s10  ;;  %s1547_s7 = sshll.u32 %s275_s5, 3 }
  0x23   : > { %s253_s6 = sadd.s32 %s1629_s22, %s1628_s29  ;;  %s1995_s20 = scalar_lea.vmem %s2540_s3, %s1547_s7 }
  0x24   : > { %s255_s26 = sadd.s32 %s1630_s4, %s253_s6  ;;  %s225_s29 = sand.u32 1, %s1841_s13  }
  0x25   : > { %s1544_s19 = sshll.u32 %s255_s26, 3  ;;  %s1542_s30 = sshll.u32 %s225_s29, 7 }
  0x26   : > { %s2005_s9 = scalar_lea.vmem %s2537_s0, %s1544_s19  ;;  %s2161_s4 = scalar_lea.vmem [#allocation2], %s1542_s30 }
  0x27   : > { %v330_v2 = vld [vmem:[%s2005_s9 + $0x158] sm:$0xff]  ;;  %v333_v3 = vld [vmem:[%s2005_s9 + $0x170] sm:$0xff]  ;;  %v332_v7 = vld [vmem:[%s2005_s9 + $0x168] sm:$0xff] }
  0x28   : > { %v329_v4 = vld [vmem:[%s2005_s9 + $0x150] sm:$0xff]  ;;  %v426_v5 = vmul.f32 %v330_v2, %v330_v2  ;;  %v429_v6 = vmul.f32 %v333_v3, %v333_v3  ;;  %v324_v9 = vld [vmem:[%s2005_s9 + $0x128] sm:$0xff]  ;;  %v327_v10 = vld [vmem:[%s2005_s9 + $0x140] sm:$0xff]  ;;  %v428_v11 = vmul.f32 %v332_v7, %v332_v7 }
  0x29   : > { %v425_v8 = vmul.f32 %v329_v4, %v329_v4  ;;  %v420_v12 = vmul.f32 %v324_v9, %v324_v9  ;;  %v423_v13 = vmul.f32 %v327_v10, %v327_v10  ;;  %v323_v15 = vld [vmem:[%s2005_s9 + $0x120] sm:$0xff]  ;;  %v326_v16 = vld [vmem:[%s2005_s9 + $0x138] sm:$0xff]  ;;  %v321_v20 = vld [vmem:[%s2005_s9 + $0x110] sm:$0xff] }
  0x2a   : > { %v501_v14 = vpack.c.bf16 %v429_v6, %v426_v5  ;;  %v318_v19 = vld [vmem:[%s2005_s9 + $0xf8] sm:$0xff]  ;;  %v419_v21 = vmul.f32 %v323_v15, %v323_v15  ;;  %v422_v22 = vmul.f32 %v326_v16, %v326_v16  ;;  %v417_v24 = vmul.f32 %v321_v20, %v321_v20  ;;  %v317_v26 = vld [vmem:[%s2005_s9 + $0xf0] sm:$0xff]  ;;  %v320_v27 = vld [vmem:[%s2005_s9 + $0x108] sm:$0xff] }
  0x2b   : > { %v500_v17 = vpack.c.bf16 %v428_v11, %v425_v8  ;;  %v498_v18 = vpack.c.bf16 %v423_v13, %v420_v12  ;;  %v414_v23 = vmul.f32 %v318_v19, %v318_v19  ;;  %v379_v28 = vld [vmem:[%s2005_s9 + $0x2e0] sm:$0xff]  ;;  %v382_v30 = vld [vmem:[%s2005_s9 + $0x2f8] sm:$0xff]  ;;  %v312_v33 = vld [vmem:[%s2005_s9 + $0xc8] sm:$0xff]  ;;  %v413_v40 = vmul.f32 %v317_v26, %v317_v26 }
  0x2c   : > { %612 = vmatprep.subr.bf16.mxu0 %v501_v14  ;;  %v497_v25 = vpack.c.bf16 %v422_v22, %v419_v21  ;;  %v331_v31 = vld [vmem:[%s2005_s9 + $0x160] sm:$0xff]  ;;  %v334_v32 = vld [vmem:[%s2005_s9 + $0x178] sm:$0xff]  ;;  %v475_v35 = vmul.f32 %v379_v28, %v379_v28  ;;  %v478_v36 = vmul.f32 %v382_v30, %v382_v30  ;;  %v373_v38 = vld [vmem:[%s2005_s9 + $0x2b0] sm:$0xff]  ;;  %v416_v41 = vmul.f32 %v320_v27, %v320_v27 }
  0x2d   : > { %613 = vmatpush1.bf16.xpose.msra.mxu0 %v500_v17  ;;  %v495_v29 = vpack.c.bf16 %v417_v24, %v414_v23  ;;  %v315_v34 = vld [vmem:[%s2005_s9 + $0xe0] sm:$0xff]  ;;  %v427_v37 = vmul.f32 %v331_v31, %v331_v31  ;;  %v376_v39 = vld [vmem:[%s2005_s9 + $0x2c8] sm:$0xff]  ;;  %v430_v42 = vmul.f32 %v334_v32, %v334_v32  ;;  %v325_v43 = vld [vmem:[%s2005_s9 + $0x130] sm:$0xff]  ;;  %v408_v45 = vmul.f32 %v312_v33, %v312_v33 }
  0x2e   : > { %614 = vmatprep.subr.bf16.mxu0 %v498_v18  ;;  %v328_v44 = vld [vmem:[%s2005_s9 + $0x148] sm:$0xff]  ;;  %v411_v46 = vmul.f32 %v315_v34, %v315_v34  ;;  %v526_v47 = vpack.c.bf16 %v478_v36, %v475_v35  ;;  %v469_v48 = vmul.f32 %v373_v38, %v373_v38  ;;  %v472_v50 = vmul.f32 %v376_v39, %v376_v39  ;;  %v367_v53 = vld [vmem:[%s2005_s9 + $0x280] sm:$0xff]  ;;  %v370_v54 = vld [vmem:[%s2005_s9 + $0x298] sm:$0xff] }
  0x2f   : > { %v502_v49 = vpack.c.bf16 %v430_v42, %v427_v37  ;;  %v421_v51 = vmul.f32 %v325_v43, %v325_v43  ;;  %v424_v52 = vmul.f32 %v328_v44, %v328_v44  ;;  %v494_v55 = vpack.c.bf16 %v416_v41, %v413_v40  ;;  %v311_v59 = vld [vmem:[%s2005_s9 + $0xc0] sm:$0xff]  ;;  %v314_v60 = vld [vmem:[%s2005_s9 + $0xd8] sm:$0xff]  ;;  %v309_v62 = vld [vmem:[%s2005_s9 + $0xb0] sm:$0xff] }
  0x30   : > { %1612 = vmatprep.subr.msk.bf16.mxu1 %vm557_vm0, %v526_v47  ;;  %v523_v57 = vpack.c.bf16 %v472_v50, %v469_v48  ;;  %v492_v58 = vpack.c.bf16 %v411_v46, %v408_v45  ;;  %v306_v61 = vld [vmem:[%s2005_s9 + $0x98] sm:$0xff]  ;;  %v463_v2 = vmul.f32 %v367_v53, %v367_v53  ;;  %v466_v3 = vmul.f32 %v370_v54, %v370_v54  ;;  %v319_v4 = vld [vmem:[%s2005_s9 + $0x100] sm:$0xff]  ;;  %v361_v14 = vld [vmem:[%s2005_s9 + $0x250] sm:$0xff] }
  0x31   : > { %v586_v56 = vsel %vm557_vm0, %v502_v49, 0  ;;  %v499_v63 = vpack.c.bf16 %v424_v52, %v421_v51  ;;  %v322_v5 = vld [vmem:[%s2005_s9 + $0x118] sm:$0xff]  ;;  %v407_v6 = vmul.f32 %v311_v59, %v311_v59  ;;  %v410_v7 = vmul.f32 %v314_v60, %v314_v60  ;;  %v364_v15 = vld [vmem:[%s2005_s9 + $0x268] sm:$0xff]  ;;  %v305_v18 = vld [vmem:[%s2005_s9 + $0x90] sm:$0xff] }
  0x32   : > { %1573 = vmatpush3.bf16.xpose.msra.mxu1 %v586_v56  ;;  %v402_v8 = vmul.f32 %v306_v61, %v306_v61  ;;  %v405_v9 = vmul.f32 %v309_v62, %v309_v62  ;;  %v520_v11 = vpack.c.bf16 %v466_v3, %v463_v2  ;;  %v415_v12 = vmul.f32 %v319_v4, %v319_v4  ;;  %v308_v19 = vld [vmem:[%s2005_s9 + $0xa8] sm:$0xff]  ;;  %v303_v21 = vld [vmem:[%s2005_s9 + $0x80] sm:$0xff]  ;;  %v358_v36 = vld [vmem:[%s2005_s9 + $0x238] sm:$0xff] }
  0x33   : > { %1613 = vmatprep.subr.msk.bf16.mxu1 %vm557_vm0, %v523_v57  ;;  %v583_v10 = vsel %vm557_vm0, %v499_v63, 0  ;;  %v418_v13 = vmul.f32 %v322_v5, %v322_v5  ;;  %v491_v16 = vpack.c.bf16 %v410_v7, %v407_v6  ;;  %v300_v20 = vld [vmem:[%s2005_s9 + $0x68] sm:$0xff]  ;;  %v457_v23 = vmul.f32 %v361_v14, %v361_v14  ;;  %v355_v35 = vld [vmem:[%s2005_s9 + $0x220] sm:$0xff]  ;;  %v302_v40 = vld [vmem:[%s2005_s9 + $0x78] sm:$0xff] }
  0x34   : > { %v489_v17 = vpack.c.bf16 %v405_v9, %v402_v8  ;;  %v460_v24 = vmul.f32 %v364_v15, %v364_v15  ;;  %v316_v26 = vld [vmem:[%s2005_s9 + $0xe8] sm:$0xff]  ;;  %v401_v27 = vmul.f32 %v305_v18, %v305_v18  ;;  %v404_v28 = vmul.f32 %v308_v19, %v308_v19  ;;  %v299_v39 = vld [vmem:[%s2005_s9 + $0x60] sm:$0xff]  ;;  %v294_v41 = vld [vmem:[%s2005_s9 + $0x38] sm:$0xff] }
  0x35   : > { %615 = vmatpush1.bf16.xpose.msra.mxu0 %v497_v25  ;;  %v496_v22 = vpack.c.bf16 %v418_v13, %v415_v12  ;;  %v313_v25 = vld [vmem:[%s2005_s9 + $0xd0] sm:$0xff]  ;;  %v399_v30 = vmul.f32 %v303_v21, %v303_v21  ;;  %v412_v34 = vmul.f32 %v316_v26, %v316_v26  ;;  %v451_v44 = vmul.f32 %v355_v35, %v355_v35  ;;  %v307_v46 = vld [vmem:[%s2005_s9 + $0xa0] sm:$0xff]  ;;  %v310_v47 = vld [vmem:[%s2005_s9 + $0xb8] sm:$0xff] }
  0x36   : > { %616 = vmatprep.subr.bf16.mxu0 %v495_v29  ;;  %v396_v29 = vmul.f32 %v300_v20, %v300_v20  ;;  %v517_v32 = vpack.c.bf16 %v460_v24, %v457_v23  ;;  %v409_v33 = vmul.f32 %v313_v25, %v313_v25  ;;  %v488_v37 = vpack.c.bf16 %v404_v28, %v401_v27  ;;  %v297_v42 = vld [vmem:[%s2005_s9 + $0x50] sm:$0xff]  ;;  %v352_v57 = vld [vmem:[%s2005_s9 + $0x208] sm:$0xff]  ;;  %v291_v63 = vld [vmem:[%s2005_s9 + $0x20] sm:$0xff] }
  0x37   : > { %v580_v31 = vsel %vm557_vm0, %v496_v22, 0  ;;  %v454_v45 = vmul.f32 %v358_v36, %v358_v36  ;;  %v395_v48 = vmul.f32 %v299_v39, %v299_v39  ;;  %v398_v49 = vmul.f32 %v302_v40, %v302_v40  ;;  %v349_v56 = vld [vmem:[%s2005_s9 + $0x1f0] sm:$0xff]  ;;  %v296_v61 = vld [vmem:[%s2005_s9 + $0x48] sm:$0xff]  ;;  %v343_v15 = vld [vmem:[%s2005_s9 + $0x1c0] sm:$0xff] }
  0x38   : > { %v486_v38 = vpack.c.bf16 %v399_v30, %v396_v29  ;;  %v493_v43 = vpack.c.bf16 %v412_v34, %v409_v33  ;;  %v390_v50 = vmul.f32 %v294_v41, %v294_v41  ;;  %v393_v51 = vmul.f32 %v297_v42, %v297_v42  ;;  %v293_v60 = vld [vmem:[%s2005_s9 + $0x30] sm:$0xff]  ;;  %v288_v62 = vld [vmem:[%s2005_s9 + $0x8] sm:$0xff]  ;;  %v287_v19 = vld [vmem:[%s2005_s9] sm:$0xff] }
  0x39   : > { %v514_v53 = vpack.c.bf16 %v454_v45, %v451_v44  ;;  %v403_v54 = vmul.f32 %v307_v46, %v307_v46  ;;  %v445_v3 = vmul.f32 %v349_v56, %v349_v56  ;;  %v448_v4 = vmul.f32 %v352_v57, %v352_v57  ;;  %v301_v5 = vld [vmem:[%s2005_s9 + $0x70] sm:$0xff]  ;;  %v304_v6 = vld [vmem:[%s2005_s9 + $0x88] sm:$0xff]  ;;  %v290_v20 = vld [vmem:[%s2005_s9 + $0x18] sm:$0xff] }
  0x3a   : > { %1575 = vmatpush3.bf16.xpose.msra.mxu1 %v583_v10  ;;  %v577_v52 = vsel %vm557_vm0, %v493_v43, 0  ;;  %v483_v59 = vpack.c.bf16 %v393_v51, %v390_v50  ;;  %v389_v7 = vmul.f32 %v293_v60, %v293_v60  ;;  %v392_v8 = vmul.f32 %v296_v61, %v296_v61  ;;  %v378_v21 = vld [vmem:[%s2005_s9 + $0x2d8] sm:$0xff]  ;;  %v381_v22 = vld [vmem:[%s2005_s9 + $0x2f0] sm:$0xff]  ;;  %v295_v26 = vld [vmem:[%s2005_s9 + $0x40] sm:$0xff] }
  0x3b   : > { %1614 = vmatprep.subr.msk.bf16.mxu1 %vm557_vm0, %v520_v11  ;;  %v384_v9 = vmul.f32 %v288_v62, %v288_v62  ;;  %v387_v10 = vmul.f32 %v291_v63, %v291_v63  ;;  %v511_v12 = vpack.c.bf16 %v448_v4, %v445_v3  ;;  %v397_v13 = vmul.f32 %v301_v5, %v301_v5  ;;  %v298_v27 = vld [vmem:[%s2005_s9 + $0x58] sm:$0xff]  ;;  %v337_v36 = vld [vmem:[%s2005_s9 + $0x190] sm:$0xff]  ;;  %v380_v41 = vld [vmem:[%s2005_s9 + $0x2e8] sm:$0xff] }
  0x3c   : > { %v400_v14 = vmul.f32 %v304_v6, %v304_v6  ;;  %v439_v24 = vmul.f32 %v343_v15, %v343_v15  ;;  %v383_v28 = vmul.f32 %v287_v19, %v287_v19  ;;  %v386_v29 = vmul.f32 %v290_v20, %v290_v20  ;;  %v377_v40 = vld [vmem:[%s2005_s9 + $0x2d0] sm:$0xff]  ;;  %v372_v42 = vld [vmem:[%s2005_s9 + $0x2a8] sm:$0xff]  ;;  %v375_v43 = vld [vmem:[%s2005_s9 + $0x2c0] sm:$0xff] }
  0x3d   : > { %617 = vmatpush1.bf16.xpose.msra.mxu0 %v494_v55  ;;  %v406_v55 = vmul.f32 %v310_v47, %v310_v47  ;;  %v480_v18 = vpack.c.bf16 %v387_v10, %v384_v9  ;;  %v474_v30 = vmul.f32 %v378_v21, %v378_v21  ;;  %v391_v34 = vmul.f32 %v295_v26, %v295_v26  ;;  %v289_v47 = vld [vmem:[%s2005_s9 + $0x10] sm:$0xff]  ;;  %v374_v60 = vld [vmem:[%s2005_s9 + $0x2b8] sm:$0xff]  ;;  %v368_v10 = vld [vmem:[%s2005_s9 + $0x288] sm:$0xff] }
  0x3e   : > { %618 = vmatprep.subr.bf16.mxu0 %v492_v58  ;;  %v485_v58 = vpack.c.bf16 %v398_v49, %v395_v48  ;;  %v487_v23 = vpack.c.bf16 %v400_v14, %v397_v13  ;;  %v394_v35 = vmul.f32 %v298_v27, %v298_v27  ;;  %v433_v45 = vmul.f32 %v337_v36, %v337_v36  ;;  %v292_v48 = vld [vmem:[%s2005_s9 + $0x28] sm:$0xff]  ;;  %v366_v61 = vld [vmem:[%s2005_s9 + $0x278] sm:$0xff]  ;;  %v369_v62 = vld [vmem:[%s2005_s9 + $0x290] sm:$0xff] }
  0x3f   : > { %v490_v2 = vpack.c.bf16 %v406_v55, %v403_v54  ;;  %v473_v49 = vmul.f32 %v377_v40, %v377_v40  ;;  %v476_v50 = vmul.f32 %v380_v41, %v380_v41  ;;  %v468_v51 = vmul.f32 %v372_v42, %v372_v42  ;;  %v365_v9 = vld [vmem:[%s2005_s9 + $0x270] sm:$0xff]  ;;  %v359_v20 = vld [vmem:[%s2005_s9 + $0x240] sm:$0xff]  ;;  %v362_v21 = vld [vmem:[%s2005_s9 + $0x258] sm:$0xff] }
  0x40   : > { %v484_v44 = vpack.c.bf16 %v394_v35, %v391_v34  ;;  %v385_v55 = vmul.f32 %v289_v47, %v289_v47  ;;  %v388_v56 = vmul.f32 %v292_v48, %v292_v48  ;;  %v470_v3 = vmul.f32 %v374_v60, %v374_v60  ;;  %v347_v40 = vld [vmem:[%s2005_s9 + $0x1e0] sm:$0xff]  ;;  %v350_v41 = vld [vmem:[%s2005_s9 + $0x1f8] sm:$0xff] }
  0x41   : > { %v574_v11 = vsel %vm557_vm0, %v490_v2, 0  ;;  %v524_v57 = vpack.c.bf16 %v476_v50, %v473_v49  ;;  %v462_v4 = vmul.f32 %v366_v61, %v366_v61  ;;  %v465_v5 = vmul.f32 %v369_v62, %v369_v62  ;;  %v342_v42 = vld [vmem:[%s2005_s9 + $0x1b8] sm:$0xff]  ;;  %v341_v50 = vld [vmem:[%s2005_s9 + $0x1b0] sm:$0xff]  ;;  %v335_v60 = vld [vmem:[%s2005_s9 + $0x180] sm:$0xff] }
  0x42   : > { %1577 = vmatpush3.bf16.xpose.msra.mxu1 %v580_v31  ;;  %v477_v31 = vmul.f32 %v381_v22, %v381_v22  ;;  %v481_v63 = vpack.c.bf16 %v388_v56, %v385_v55  ;;  %v461_v13 = vmul.f32 %v365_v9, %v365_v9  ;;  %v464_v14 = vmul.f32 %v368_v10, %v368_v10  ;;  %v354_v22 = vld [vmem:[%s2005_s9 + $0x218] sm:$0xff] }
  0x43   : > { %1615 = vmatprep.subr.msk.bf16.mxu1 %vm557_vm0, %v517_v32  ;;  %v571_v32 = vsel %vm557_vm0, %v487_v23, 0  ;;  %v357_v23 = vld [vmem:[%s2005_s9 + $0x230] sm:$0xff]  ;;  %v450_v26 = vmul.f32 %v354_v22, %v354_v22  ;;  %v338_v61 = vld [vmem:[%s2005_s9 + $0x198] sm:$0xff]  ;;  %v431_v62 = vmul.f32 %v335_v60, %v335_v60 }
  0x44   : > { %v525_v39 = vpack.c.bf16 %v477_v31, %v474_v30  ;;  %v565_v6 = vsel %vm557_vm0, %v481_v63, 0  ;;  %v453_v27 = vmul.f32 %v357_v23, %v357_v23  ;;  %v353_v30 = vld [vmem:[%s2005_s9 + $0x210] sm:$0xff]  ;;  %v356_v31 = vld [vmem:[%s2005_s9 + $0x228] sm:$0xff]  ;;  %v434_v63 = vmul.f32 %v338_v61, %v338_v61 }
  0x45   : > { %619 = vmatpush1.bf16.xpose.msra.mxu0 %v491_v16  ;;  %v346_v16 = vld [vmem:[%s2005_s9 + $0x1d8] sm:$0xff]  ;;  %v449_v34 = vmul.f32 %v353_v30, %v353_v30  ;;  %v452_v35 = vmul.f32 %v356_v31, %v356_v31 }
  0x46   : > { %620 = vmatprep.subr.bf16.mxu0 %v489_v17  ;;  %v482_v17 = vpack.c.bf16 %v392_v8, %v389_v7  ;;  %v442_v25 = vmul.f32 %v346_v16, %v346_v16  ;;  %v519_v8 = vpack.c.bf16 %v465_v5, %v462_v4  ;;  %v2146_v4 = vld [vmem:[%s2538_s1 + $0x1c] ss:$12 sps:$4 sm:$0xff]   ;;  %v2153_v5 = vld [vmem:[%s2538_s1 + $0x18] ss:$12 sps:$4 sm:$0xff]  }
  0x48   : > { %v508_v33 = vpack.c.bf16 %v442_v25, %v439_v24  ;;  %v455_v24 = vmul.f32 %v359_v20, %v359_v20  ;;  %v458_v25 = vmul.f32 %v362_v21, %v362_v21 }
  0x4a   : > { %1579 = vmatpush3.bf16.xpose.msra.mxu1 %v577_v52  ;;  %v471_v52 = vmul.f32 %v375_v43, %v375_v43  ;;  %v345_v43 = vld [vmem:[%s2005_s9 + $0x1d0] sm:$0xff] }
  0x4b   : > { %1616 = vmatprep.subr.msk.bf16.mxu1 %vm557_vm0, %v514_v53  ;;  %v568_v53 = vsel %vm557_vm0, %v484_v44, 0  ;;  %v443_v44 = vmul.f32 %v347_v40, %v347_v40  ;;  %v441_v47 = vmul.f32 %v345_v43, %v345_v43 }
  0x4d   : > { %621 = vmatpush1.bf16.xpose.msra.mxu0 %v488_v37  ;;  %v340_v37 = vld [vmem:[%s2005_s9 + $0x1a8] sm:$0xff] }
  0x4e   : > { %622 = vmatprep.subr.bf16.mxu0 %v486_v38  ;;  %v479_v38 = vpack.c.bf16 %v386_v29, %v383_v28  ;;  %v436_v46 = vmul.f32 %v340_v37, %v340_v37  ;;  %v515_v28 = vpack.c.bf16 %v458_v25, %v455_v24  ;;  %v513_v29 = vpack.c.bf16 %v453_v27, %v450_v26 }
  0x50   : > { %v505_v54 = vpack.c.bf16 %v436_v46, %v433_v45  ;;  %v446_v45 = vmul.f32 %v350_v41, %v350_v41  ;;  %v438_v46 = vmul.f32 %v342_v42, %v342_v42 }
  0x52   : > { %1581 = vmatpush3.bf16.xpose.msra.mxu1 %v574_v11  ;;  %v360_v11 = vld [vmem:[%s2005_s9 + $0x248] sm:$0xff]  ;;  %v509_v48 = vpack.c.bf16 %v446_v45, %v443_v44  ;;  %v507_v49 = vpack.c.bf16 %v441_v47, %v438_v46 }
  0x53   : > { %1617 = vmatprep.subr.msk.bf16.mxu1 %vm557_vm0, %v511_v12  ;;  %v363_v12 = vld [vmem:[%s2005_s9 + $0x260] sm:$0xff]  ;;  %v456_v15 = vmul.f32 %v360_v11, %v360_v11 }
  0x54   : > { %v459_v16 = vmul.f32 %v363_v12, %v363_v12 }
  0x55   : > { %623 = vmatpush1.bf16.xpose.msra.mxu0 %v485_v58  ;;  %v522_v58 = vpack.c.bf16 %v471_v52, %v468_v51  ;;  %v344_v51 = vld [vmem:[%s2005_s9 + $0x1c8] sm:$0xff] }
  0x56   : > { %624 = vmatprep.subr.bf16.mxu0 %v483_v59  ;;  %v371_v59 = vld [vmem:[%s2005_s9 + $0x2a0] sm:$0xff]  ;;  %v516_v19 = vpack.c.bf16 %v459_v16, %v456_v15  ;;  %v336_v52 = vld [vmem:[%s2005_s9 + $0x188] sm:$0xff]  ;;  %v440_v55 = vmul.f32 %v344_v51, %v344_v51 }
  0x57   : > { %v467_v2 = vmul.f32 %v371_v59, %v371_v59  ;;  %v432_v56 = vmul.f32 %v336_v52, %v336_v52 }
  0x59   : > { %v521_v7 = vpack.c.bf16 %v470_v3, %v467_v2  ;;  %v503_v2 = vpack.c.bf16 %v434_v63, %v431_v62  ;;  %v2141_v3 = vld [vmem:[%s2538_s1] ss:$12 sps:$4 sm:$0xff]  }
  0x5a   : > { %1583 = vmatpush3.bf16.xpose.msra.mxu1 %v571_v32  ;;  %v348_v32 = vld [vmem:[%s2005_s9 + $0x1e8] sm:$0xff] }
  0x5b   : > { %1618 = vmatprep.subr.msk.bf16.mxu1 %vm557_vm0, %v508_v33  ;;  %v351_v33 = vld [vmem:[%s2005_s9 + $0x200] sm:$0xff]  ;;  %v444_v36 = vmul.f32 %v348_v32, %v348_v32 }
  0x5c   : > { %v447_v37 = vmul.f32 %v351_v33, %v351_v33 }
  0x5d   : > { %625 = vmatpush1.bf16.xpose.msra.mxu0 %v482_v17  ;;  %v2112_v17 = vld [vmem:[%s2538_s1 + $0x20] ss:$12 sps:$4 sm:$0xff]  }
  0x5e   : > { %626 = vmatprep.subr.bf16.mxu0 %v480_v18  ;;  %v518_v18 = vpack.c.bf16 %v464_v14, %v461_v13 }
  0x62   : > { %1585 = vmatpush3.bf16.xpose.msra.mxu1 %v568_v53  ;;  %v339_v53 = vld [vmem:[%s2005_s9 + $0x1a0] sm:$0xff] }
  0x63   : > { %1619 = vmatprep.subr.msk.bf16.mxu1 %vm557_vm0, %v505_v54  ;;  %v437_v54 = vmul.f32 %v341_v50, %v341_v50 }
  0x65   : > { %627 = vmatpush1.bf16.xpose.msra.mxu0 %v479_v38  ;;  %v512_v38 = vpack.c.bf16 %v452_v35, %v449_v34 }
  0x66   : > { %628 = vmatprep.subr.bf16.mxu0 %v525_v39  ;;  %v510_v39 = vpack.c.bf16 %v447_v37, %v444_v36 }
  0x6a   : > { %1587 = vmatpush3.bf16.xpose.msra.mxu1 %v565_v6 }
  0x6d   : > { %629 = vmatpush2.bf16.xpose.msra.mxu0 %v524_v57  ;;  %v435_v57 = vmul.f32 %v339_v53, %v339_v53 }
  0x6e   : > { %630 = vmatprep.subr.bf16.mxu0 %v522_v58  ;;  %v506_v58 = vpack.c.bf16 %v440_v55, %v437_v54 }
  0x6f   : > { %v504_v59 = vpack.c.bf16 %v435_v57, %v432_v56 }
  0x71   : > { %1589 = vmatmul.mubr.msk.bf16.vlgmr.msra.gmra.mxu1 %vm557_vm0, %v2000_v0 }
  0x72   : > { %1590 = vmatprep.mubr.msk.bf16.mxu1 %vm557_vm0, %v2112_v17 }
  0x75   : > { %631 = vmatpush2.bf16.xpose.msra.mxu0 %v521_v7 }
  0x76   : > { %632 = vmatprep.subr.bf16.mxu0 %v519_v8 }
  0x79   : > { %1591 = vmatmul.mubr.msk.bf16.gmra.mxu1 %vm557_vm0, %v2112_v17 }
  0x7d   : > { %633 = vmatpush2.bf16.xpose.msra.mxu0 %v518_v18 }
  0x7e   : > { %634 = vmatprep.subr.bf16.mxu0 %v516_v19 }
  0x85   : > { %635 = vmatpush2.bf16.xpose.msra.mxu0 %v515_v28 }
  0x86   : > { %636 = vmatprep.subr.bf16.mxu0 %v513_v29 }
  0x8d   : > { %637 = vmatpush2.bf16.xpose.msra.mxu0 %v512_v38 }
  0x8e   : > { %638 = vmatprep.subr.bf16.mxu0 %v510_v39 }
  0x95   : > { %639 = vmatpush2.bf16.xpose.msra.mxu0 %v509_v48 }
  0x96   : > { %640 = vmatprep.subr.bf16.mxu0 %v507_v49 }
  0x9d   : > { %641 = vmatpush2.bf16.xpose.msra.mxu0 %v506_v58 }
  0x9e   : > { %642 = vmatprep.subr.bf16.mxu0 %v504_v59 }
  0xa5   : > { %643 = vmatpush2.bf16.xpose.msra.mxu0 %v503_v2 }
  0xac   : > { %645 = vmatmul.mubr.bf16.vlgmr.msra.gmra.mxu0 %v2141_v3 }
  0xad   : > { %654 = vmatprep.mubr.bf16.mxu0 %v2146_v4 }
  0xb4   : > { %655 = vmatmul.mubr.bf16.gmra.mxu0 %v2153_v5 }
 0x131   : > { %v699_v6 = vpop.f32.mrf.mxu1 }
 0x133   : > { %v701_v7 = vpop.f32.mrf.mxu1 }
 0x135   : > { %v703_v8 = vpop.f32.mrf.mxu1 }
 0x137   : > { %v705_v10 = vpop.f32.mrf.mxu1 }
 0x139   : > { %v709_v16 = vpop.f32.mrf.mxu1 }
 0x13b   : > { %v711_v23 = vpop.f32.mrf.mxu1 }
 0x13d   : > { %v713_v30 = vpop.f32.mrf.mxu1 }
 0x13f   : > { %v715_v37 = vpop.f32.mrf.mxu1 }
 0x16c   : > { %v646_v9 = vpop.f32.mrf.mxu0 }
 0x16d   : > { %v647_v11 = vadd.f32 1e-12, %v646_v9 }
 0x16e   : > { %v648_v12 = vpop.f32.mrf.mxu0 }
 0x16f   : > { %v700_v13 = vadd.f32 %v699_v6, %v647_v11  ;;  %v649_v14 = vadd.f32 1e-12, %v648_v12 }
 0x170   : > { %v650_v15 = vpop.f32.mrf.mxu0 }
 0x171   : > { %1731 = vlog2.f32 %v700_v13  ;;  %v702_v18 = vadd.f32 %v701_v7, %v649_v14  ;;  %v651_v19 = vadd.f32 1e-12, %v650_v15 }
 0x172   : > { %v652_v20 = vpop.f32.mrf.mxu0 }
 0x173   : > { %1733 = vlog2.f32 %v702_v18  ;;  %v704_v21 = vadd.f32 %v703_v8, %v651_v19  ;;  %v653_v22 = vadd.f32 1e-12, %v652_v20 }
 0x174   : > { %v656_v24 = vpop.f32.mrf.mxu0 }
 0x175   : > { %1735 = vlog2.f32 %v704_v21  ;;  %v706_v25 = vadd.f32 %v705_v10, %v653_v22  ;;  %v657_v26 = vadd.f32 1e-12, %v656_v24 }
 0x176   : > { %v658_v27 = vpop.f32.mrf.mxu0 }
 0x177   : > { %1737 = vlog2.f32 %v706_v25  ;;  %v710_v28 = vadd.f32 %v709_v16, %v657_v26  ;;  %v659_v29 = vadd.f32 1e-12, %v658_v27 }
 0x178   : > { %v660_v31 = vpop.f32.mrf.mxu0 }
 0x179   : > { %1739 = vlog2.f32 %v710_v28  ;;  %v712_v32 = vadd.f32 %v711_v23, %v659_v29  ;;  %v661_v33 = vadd.f32 1e-12, %v660_v31 }
 0x17a   : > { %v662_v34 = vpop.f32.mrf.mxu0 }
 0x17b   : > { %1741 = vlog2.f32 %v712_v32  ;;  %v714_v35 = vadd.f32 %v713_v30, %v661_v33  ;;  %v663_v36 = vadd.f32 1e-12, %v662_v34 }
 0x17d   : > { %1743 = vlog2.f32 %v714_v35  ;;  %v716_v38 = vadd.f32 %v715_v37, %v663_v36 }
 0x17e   : > { %v1732_v39 = vpop.eup %1731 }
 0x17f   : > { %v2159_v40 = vmul.f32 0.6931472, %v1732_v39  ;;  %1745 = vlog2.f32 %v716_v38 }
 0x180   : > { %v1734_v41 = vpop.eup %1733 }
 0x181   : > { %734 = vst [vmem:[%s2161_s4] sm:$0xff] %v2159_v40  ;;  %v2165_v42 = vmul.f32 0.6931472, %v1734_v41 }
 0x182   : > { %v1736_v43 = vpop.eup %1735 }
 0x183   : > { %735 = vst [vmem:[%s2161_s4 + $0x8] sm:$0xff] %v2165_v42  ;;  %v2169_v44 = vmul.f32 0.6931472, %v1736_v43 }
 0x184   : > { %v1738_v45 = vpop.eup %1737 }
 0x185   : > { %736 = vst [vmem:[%s2161_s4 + $0x20] sm:$0xff] %v2169_v44  ;;  %v2173_v46 = vmul.f32 0.6931472, %v1738_v45 }
 0x186   : > { %v1740_v47 = vpop.eup %1739 }
 0x187   : > { %737 = vst [vmem:[%s2161_s4 + $0x28] sm:$0xff] %v2173_v46  ;;  %v2177_v48 = vmul.f32 0.6931472, %v1740_v47 }
 0x188   : > { %v1742_v49 = vpop.eup %1741 }
 0x189   : > { %738 = vst [vmem:[%s2161_s4 + $0x40] sm:$0xff] %v2177_v48  ;;  %v2181_v50 = vmul.f32 0.6931472, %v1742_v49 }
 0x18a   : > { %v1744_v51 = vpop.eup %1743 }
 0x18b   : > { %739 = vst [vmem:[%s2161_s4 + $0x48] sm:$0xff] %v2181_v50  ;;  %v2185_v52 = vmul.f32 0.6931472, %v1744_v51  ;;  %745 = sbr.rel (%p1556_p2) target bundleno = 547 (0x223), region = 32 }
 0x18c   : > { %v1746_v53 = vpop.eup %1745 }
 0x18d   : > { %740 = vst [vmem:[%s2161_s4 + $0x60] sm:$0xff] %v2185_v52  ;;  %v2189_v54 = vmul.f32 0.6931472, %v1746_v53 }
 0x18f   : > { %741 = vst [vmem:[%s2161_s4 + $0x68] sm:$0xff] %v2189_v54 }
 0x190   : > { %v757_v55 = vadd.f32 %v2181_v50, %v2177_v48  ;;  %v751_v56 = vadd.f32 %v2165_v42, %v2159_v40  ;;  %v760_v57 = vadd.f32 %v2189_v54, %v2185_v52  ;;  %v754_v58 = vadd.f32 %v2173_v46, %v2169_v44 }
 0x191   : > { %vm746_vm1 = vcmask 23552   ;;  %v1875_v59 = vmov 0.0   ;;  %vm768_vm2 = vcmask 7168  }
 0x192   : > { %758 = vadd.xlane.f32.xlu1 %v757_v55  ;;  %752 = vadd.xlane.f32.xlu0 %v751_v56  ;;  %749 = vst.msk [vmem:[%s1995_s20 + $0x10] sm:$0xff] %vm746_vm1, %v1875_v59  ;;  %747 = vst.msk [vmem:[%s1995_s20] sm:$0xff] %vm746_vm1, %v1875_v59 }
 0x193   : > { %748 = vst.msk [vmem:[%s1995_s20 + $0x8] sm:$0xff] %vm746_vm1, %v1875_v59  ;;  %750 = vst.msk [vmem:[%s1995_s20 + $0x18] sm:$0xff] %vm746_vm1, %v1875_v59 }
 0x196   : > { %761 = vadd.xlane.f32.xlu1 %v760_v57  ;;  %755 = vadd.xlane.f32.xlu0 %v754_v58 }
 0x21b   : > { %v759_v60 = vpop.xlane.xlu1 %758  ;;  %v753_v61 = vpop.xlane.xlu0 %752 }
 0x21c   : > { %v766_v62 = vmul.f32 0.00390625, %v759_v60  ;;  %v764_v63 = vmul.f32 0.00390625, %v753_v61 }
 0x21e   : > { %771 = vst.msk [vmem:[%s1995_s20 + $0x10] sm:$0xff] %vm768_vm2, %v766_v62  ;;  %769 = vst.msk [vmem:[%s1995_s20] sm:$0xff] %vm768_vm2, %v764_v63 }
 0x21f   : > { %v762_v2 = vpop.xlane.xlu1 %761  ;;  %v756_v6 = vpop.xlane.xlu0 %755 }
 0x220   : > { %v767_v7 = vmul.f32 0.00390625, %v762_v2  ;;  %v765_v8 = vmul.f32 0.00390625, %v756_v6 }
 0x222   : > { %772 = vst.msk [vmem:[%s1995_s20 + $0x18] sm:$0xff] %vm768_vm2, %v767_v7  ;;  %770 = vst.msk [vmem:[%s1995_s20 + $0x8] sm:$0xff] %vm768_vm2, %v765_v8 }
 0x223 PF: > { %v897_v9 = vld [vmem:[%s2005_s9 + $0x458] sm:$0xff]  ;;  %v900_v10 = vld [vmem:[%s2005_s9 + $0x470] sm:$0xff]  ;;  %1608 = vmatprep.mubr.msk.bf16.mxu0 %vm557_vm0, %v2000_v0  ;;  %1174 = vmatprep.mubr.bf16.mxu1 %v2010_v1  ;;  %v899_v14 = vld [vmem:[%s2005_s9 + $0x468] sm:$0xff]  ;;  %s1557_s5 = sshll.u32 %s1849_s15, 9  ;;  %vm1342_vm7 = vcmask 15368   ;;  %vm1355_vm8 = vcmask 23568  }
 0x224   : > { %v896_v11 = vld [vmem:[%s2005_s9 + $0x450] sm:$0xff]  ;;  %v993_v12 = vmul.f32 %v897_v9, %v897_v9  ;;  %v996_v13 = vmul.f32 %v900_v10, %v900_v10  ;;  %v891_v16 = vld [vmem:[%s2005_s9 + $0x428] sm:$0xff]  ;;  %v894_v18 = vld [vmem:[%s2005_s9 + $0x440] sm:$0xff]  ;;  %v995_v19 = vmul.f32 %v899_v14, %v899_v14  ;;  %s2453_s6 = scalar_lea.sflag [#allocation3], %s225_s29  ;;  %s1561_s7 = sshll.u32 (%p1962_p5), %s1849_s15, 2 }
 0x225   : > { %v992_v15 = vmul.f32 %v896_v11, %v896_v11  ;;  %v987_v20 = vmul.f32 %v891_v16, %v891_v16  ;;  %v990_v21 = vmul.f32 %v894_v18, %v894_v18  ;;  %v890_v23 = vld [vmem:[%s2005_s9 + $0x420] sm:$0xff]  ;;  %v893_v24 = vld [vmem:[%s2005_s9 + $0x438] sm:$0xff]  ;;  %v888_v27 = vld [vmem:[%s2005_s9 + $0x410] sm:$0xff]  ;;  %s1378_s11 = ssub.s32 (%p1962_p5), 5, %s1561_s7 }
 0x226   : > { %v1068_v22 = vpack.c.bf16 %v996_v13, %v993_v12  ;;  %v885_v1 = vld [vmem:[%s2005_s9 + $0x3f8] sm:$0xff]  ;;  %v986_v28 = vmul.f32 %v890_v23, %v890_v23  ;;  %v989_v29 = vmul.f32 %v893_v24, %v893_v24  ;;  %v984_v31 = vmul.f32 %v888_v27, %v888_v27  ;;  %v884_v33 = vld [vmem:[%s2005_s9 + $0x3f0] sm:$0xff]  ;;  %v887_v34 = vld [vmem:[%s2005_s9 + $0x408] sm:$0xff]  ;;  %p1379_p3 = scmp.lt.s32.totalorder (%p1962_p5), %s1378_s11, 4 }
 0x227   : > { %v1067_v25 = vpack.c.bf16 %v995_v19, %v992_v15  ;;  %v1065_v26 = vpack.c.bf16 %v990_v21, %v987_v20  ;;  %v981_v30 = vmul.f32 %v885_v1, %v885_v1  ;;  %v946_v35 = vld [vmem:[%s2005_s9 + $0x5e0] sm:$0xff]  ;;  %v949_v37 = vld [vmem:[%s2005_s9 + $0x5f8] sm:$0xff]  ;;  %v879_v41 = vld [vmem:[%s2005_s9 + $0x3c8] sm:$0xff]  ;;  %v980_v55 = vmul.f32 %v884_v33, %v884_v33 }
 0x228   : > { %1142 = vmatprep.subr.bf16.mxu1 %v1068_v22  ;;  %v1064_v32 = vpack.c.bf16 %v989_v29, %v986_v28  ;;  %v898_v38 = vld [vmem:[%s2005_s9 + $0x460] sm:$0xff]  ;;  %v901_v39 = vld [vmem:[%s2005_s9 + $0x478] sm:$0xff]  ;;  %v1042_v45 = vmul.f32 %v946_v35, %v946_v35  ;;  %v1045_v47 = vmul.f32 %v949_v37, %v949_v37  ;;  %v940_v51 = vld [vmem:[%s2005_s9 + $0x5b0] sm:$0xff]  ;;  %v983_v56 = vmul.f32 %v887_v34, %v887_v34 }
 0x229   : > { %1143 = vmatpush1.bf16.xpose.msra.mxu1 %v1067_v25  ;;  %v1062_v36 = vpack.c.bf16 %v984_v31, %v981_v30  ;;  %v882_v43 = vld [vmem:[%s2005_s9 + $0x3e0] sm:$0xff]  ;;  %v994_v49 = vmul.f32 %v898_v38, %v898_v38  ;;  %v943_v53 = vld [vmem:[%s2005_s9 + $0x5c8] sm:$0xff]  ;;  %v997_v57 = vmul.f32 %v901_v39, %v901_v39  ;;  %v892_v58 = vld [vmem:[%s2005_s9 + $0x430] sm:$0xff]  ;;  %v975_v60 = vmul.f32 %v879_v41, %v879_v41 }
 0x22a   : > { %1144 = vmatprep.subr.bf16.mxu1 %v1065_v26  ;;  %v895_v59 = vld [vmem:[%s2005_s9 + $0x448] sm:$0xff]  ;;  %v978_v61 = vmul.f32 %v882_v43, %v882_v43  ;;  %v1093_v62 = vpack.c.bf16 %v1045_v47, %v1042_v45  ;;  %v1036_v63 = vmul.f32 %v940_v51, %v940_v51  ;;  %v1039_v6 = vmul.f32 %v943_v53, %v943_v53  ;;  %v934_v9 = vld [vmem:[%s2005_s9 + $0x580] sm:$0xff]  ;;  %v937_v10 = vld [vmem:[%s2005_s9 + $0x598] sm:$0xff] }
 0x22b   : > { %v1069_v2 = vpack.c.bf16 %v997_v57, %v994_v49  ;;  %v988_v7 = vmul.f32 %v892_v58, %v892_v58  ;;  %v991_v8 = vmul.f32 %v895_v59, %v895_v59  ;;  %v1061_v11 = vpack.c.bf16 %v983_v56, %v980_v55  ;;  %v878_v15 = vld [vmem:[%s2005_s9 + $0x3c0] sm:$0xff]  ;;  %v881_v16 = vld [vmem:[%s2005_s9 + $0x3d8] sm:$0xff]  ;;  %v876_v19 = vld [vmem:[%s2005_s9 + $0x3b0] sm:$0xff] }
 0x22c   : > { %1620 = vmatprep.subr.msk.bf16.mxu0 %vm557_vm0, %v1093_v62  ;;  %v1090_v13 = vpack.c.bf16 %v1039_v6, %v1036_v63  ;;  %v1059_v14 = vpack.c.bf16 %v978_v61, %v975_v60  ;;  %v873_v18 = vld [vmem:[%s2005_s9 + $0x398] sm:$0xff]  ;;  %v1030_v21 = vmul.f32 %v934_v9, %v934_v9  ;;  %v1033_v22 = vmul.f32 %v937_v10, %v937_v10  ;;  %v886_v23 = vld [vmem:[%s2005_s9 + $0x400] sm:$0xff]  ;;  %v931_v33 = vld [vmem:[%s2005_s9 + $0x568] sm:$0xff] }
 0x22d   : > { %v1116_v12 = vsel %vm557_vm0, %v1069_v2, 0  ;;  %v1066_v20 = vpack.c.bf16 %v991_v8, %v988_v7  ;;  %v889_v24 = vld [vmem:[%s2005_s9 + $0x418] sm:$0xff]  ;;  %v974_v25 = vmul.f32 %v878_v15, %v878_v15  ;;  %v977_v26 = vmul.f32 %v881_v16, %v881_v16  ;;  %v875_v37 = vld [vmem:[%s2005_s9 + $0x3a8] sm:$0xff]  ;;  %v870_v39 = vld [vmem:[%s2005_s9 + $0x380] sm:$0xff] }
 0x22e   : > { %1593 = vmatpush3.bf16.xpose.msra.mxu0 %v1116_v12  ;;  %v969_v1 = vmul.f32 %v873_v18, %v873_v18  ;;  %v972_v27 = vmul.f32 %v876_v19, %v876_v19  ;;  %v1087_v29 = vpack.c.bf16 %v1033_v22, %v1030_v21  ;;  %v982_v30 = vmul.f32 %v886_v23, %v886_v23  ;;  %v867_v38 = vld [vmem:[%s2005_s9 + $0x368] sm:$0xff]  ;;  %v880_v47 = vld [vmem:[%s2005_s9 + $0x3d0] sm:$0xff]  ;;  %v922_v61 = vld [vmem:[%s2005_s9 + $0x520] sm:$0xff] }
 0x22f   : > { %1621 = vmatprep.subr.msk.bf16.mxu0 %vm557_vm0, %v1090_v13  ;;  %v1113_v28 = vsel %vm557_vm0, %v1066_v20, 0  ;;  %v985_v31 = vmul.f32 %v889_v24, %v889_v24  ;;  %v1058_v34 = vpack.c.bf16 %v977_v26, %v974_v25  ;;  %v1027_v45 = vmul.f32 %v931_v33, %v931_v33  ;;  %v883_v49 = vld [vmem:[%s2005_s9 + $0x3e8] sm:$0xff]  ;;  %v925_v62 = vld [vmem:[%s2005_s9 + $0x538] sm:$0xff]  ;;  %v866_v6 = vld [vmem:[%s2005_s9 + $0x360] sm:$0xff] }
 0x230   : > { %v1056_v35 = vpack.c.bf16 %v972_v27, %v969_v1  ;;  %v971_v53 = vmul.f32 %v875_v37, %v875_v37  ;;  %v963_v55 = vmul.f32 %v867_v38, %v867_v38  ;;  %v966_v56 = vmul.f32 %v870_v39, %v870_v39  ;;  %v869_v7 = vld [vmem:[%s2005_s9 + $0x378] sm:$0xff]  ;;  %v864_v9 = vld [vmem:[%s2005_s9 + $0x350] sm:$0xff]  ;;  %v874_v13 = vld [vmem:[%s2005_s9 + $0x3a0] sm:$0xff] }
 0x231   : > { %1145 = vmatpush1.bf16.xpose.msra.mxu1 %v1064_v32  ;;  %v928_v32 = vld [vmem:[%s2005_s9 + $0x550] sm:$0xff]  ;;  %v1063_v41 = vpack.c.bf16 %v985_v31, %v982_v30  ;;  %v976_v59 = vmul.f32 %v880_v47, %v880_v47  ;;  %v979_v60 = vmul.f32 %v883_v49, %v883_v49  ;;  %v861_v8 = vld [vmem:[%s2005_s9 + $0x338] sm:$0xff]  ;;  %v1021_v12 = vmul.f32 %v925_v62, %v925_v62  ;;  %v2267_v15 = vld [vmem:[%s1995_s20] sm:$0xff] }
 0x232   : > { %1146 = vmatprep.subr.bf16.mxu1 %v1062_v36  ;;  %v872_v36 = vld [vmem:[%s2005_s9 + $0x390] sm:$0xff]  ;;  %v1024_v43 = vmul.f32 %v928_v32, %v928_v32  ;;  %v1053_v2 = vpack.c.bf16 %v966_v56, %v963_v55  ;;  %v962_v16 = vmul.f32 %v866_v6, %v866_v6  ;;  %v965_v18 = vmul.f32 %v869_v7, %v869_v7  ;;  %v919_v27 = vld [vmem:[%s2005_s9 + $0x508] sm:$0xff]  ;;  %v2281_v30 = vld [vmem:[%s1995_s20 + $0x18] sm:$0xff] }
 0x233   : > { %v968_v51 = vmul.f32 %v872_v36, %v872_v36  ;;  %v1110_v57 = vsel %vm557_vm0, %v1063_v41, 0  ;;  %v1060_v10 = vpack.c.bf16 %v979_v60, %v976_v59  ;;  %v2270_v19 = vld [vmem:[%s1995_s20 + $0x10] sm:$0xff]  ;;  %v957_v20 = vmul.f32 %v861_v8, %v861_v8  ;;  %v863_v33 = vld [vmem:[%s2005_s9 + $0x348] sm:$0xff]  ;;  %v857_v62 = vld [vmem:[%s2005_s9 + $0x318] sm:$0xff] }
 0x234   : > { %v1084_v58 = vpack.c.bf16 %v1027_v45, %v1024_v43  ;;  %v960_v21 = vmul.f32 %v864_v9, %v864_v9  ;;  %v1876_v22 = vmov 0   ;;  %v970_v25 = vmul.f32 %v874_v13, %v874_v13  ;;  %v916_v1 = vld [vmem:[%s2005_s9 + $0x4f0] sm:$0xff]  ;;  %v871_v41 = vld [vmem:[%s2005_s9 + $0x388] sm:$0xff]  ;;  %v862_v9 = vld [vmem:[%s2005_s9 + $0x340] sm:$0xff] }
 0x235   : > { %v1055_v63 = vpack.c.bf16 %v971_v53, %v968_v51  ;;  %1747 = vset.pattern.permute.xlu0 %v1876_v22  ;;  %v1107_v23 = vsel %vm557_vm0, %v1060_v10, 0  ;;  %1748 = vset.pattern.permute.xlu1 %v1876_v22  ;;  %v860_v32 = vld [vmem:[%s2005_s9 + $0x330] sm:$0xff]  ;;  %v1012_v37 = vmul.f32 %v916_v1, %v916_v1  ;;  %v1015_v38 = vmul.f32 %v919_v27, %v919_v27  ;;  %v865_v10 = vld [vmem:[%s2005_s9 + $0x358] sm:$0xff]  ;;  %v947_v1 = vld [vmem:[%s2005_s9 + $0x5e8] sm:$0xff] }
 0x236   : > { %1595 = vmatpush3.bf16.xpose.msra.mxu0 %v1113_v28  ;;  %779 = vperm.xlu0 %1747, %v2267_v15   ;;  %v2278_v28 = vld [vmem:[%s1995_s20 + $0x8] sm:$0xff]  ;;  %v1050_v31 = vpack.c.bf16 %v960_v21, %v957_v20  ;;  %v868_v39 = vld [vmem:[%s2005_s9 + $0x370] sm:$0xff]  ;;  %v956_v43 = vmul.f32 %v860_v32, %v860_v32  ;;  %v959_v45 = vmul.f32 %v863_v33, %v863_v33 }
 0x237   : > { %1622 = vmatprep.subr.msk.bf16.mxu0 %vm557_vm0, %v1087_v29  ;;  %789 = vperm.xlu1 %1748, %v2270_v19   ;;  %v1052_v29 = vpack.c.bf16 %v965_v18, %v962_v16  ;;  %v1078_v53 = vpack.c.bf16 %v1015_v38, %v1012_v37  ;;  %v964_v55 = vmul.f32 %v868_v39, %v868_v39  ;;  %v904_v22 = vld [vmem:[%s2005_s9 + $0x490] sm:$0xff]  ;;  %v939_v27 = vld [vmem:[%s2005_s9 + $0x5a8] sm:$0xff] }
 0x238   : > { %v967_v56 = vmul.f32 %v871_v41, %v871_v41  ;;  %v1049_v59 = vpack.c.bf16 %v959_v45, %v956_v43  ;;  %v958_v20 = vmul.f32 %v862_v9, %v862_v9  ;;  %v961_v21 = vmul.f32 %v865_v10, %v865_v10  ;;  %v927_v9 = vld [vmem:[%s2005_s9 + $0x548] sm:$0xff]  ;;  %v930_v10 = vld [vmem:[%s2005_s9 + $0x560] sm:$0xff] }
 0x239   : > { %1147 = vmatpush1.bf16.xpose.msra.mxu1 %v1061_v11  ;;  %v1018_v11 = vmul.f32 %v922_v61, %v922_v61  ;;  %v854_v61 = vld [vmem:[%s2005_s9 + $0x300] sm:$0xff]  ;;  %v1000_v32 = vmul.f32 %v904_v22, %v904_v22  ;;  %v1043_v37 = vmul.f32 %v947_v1, %v947_v1  ;;  %v1035_v38 = vmul.f32 %v939_v27, %v939_v27  ;;  %v921_v22 = vld [vmem:[%s2005_s9 + $0x518] sm:$0xff] }
 0x23a   : > { %1148 = vmatprep.subr.bf16.mxu1 %v1059_v14  ;;  %v877_v14 = vld [vmem:[%s2005_s9 + $0x3b8] sm:$0xff]  ;;  %784 = vperm.xlu0 %1747, %v2278_v28   ;;  %v1054_v6 = vpack.c.bf16 %v967_v56, %v964_v55 }
 0x23b   : > { %v1081_v24 = vpack.c.bf16 %v1021_v12, %v1018_v11  ;;  %v973_v26 = vmul.f32 %v877_v14, %v877_v14  ;;  %794 = vperm.xlu1 %1748, %v2281_v30   ;;  %v950_v11 = vmul.f32 %v854_v61, %v854_v61  ;;  %v953_v12 = vmul.f32 %v857_v62, %v857_v62  ;;  %v941_v55 = vld [vmem:[%s2005_s9 + $0x5b8] sm:$0xff] }
 0x23c   : > { %v1101_v16 = vsel %vm557_vm0, %v1054_v6, 0  ;;  %v933_v56 = vld [vmem:[%s2005_s9 + $0x578] sm:$0xff] }
 0x23d   : > { %v1057_v36 = vpack.c.bf16 %v973_v26, %v970_v25  ;;  %v944_v26 = vld [vmem:[%s2005_s9 + $0x5d0] sm:$0xff]  ;;  %v1029_v61 = vmul.f32 %v933_v56, %v933_v56 }
 0x23e   : > { %1597 = vmatpush3.bf16.xpose.msra.mxu0 %v1110_v57  ;;  %v910_v57 = vld [vmem:[%s2005_s9 + $0x4c0] sm:$0xff] }
 0x23f   : > { %1623 = vmatprep.subr.msk.bf16.mxu0 %vm557_vm0, %v1084_v58  ;;  %v1104_v51 = vsel %vm557_vm0, %v1057_v36, 0  ;;  %v913_v58 = vld [vmem:[%s2005_s9 + $0x4d8] sm:$0xff]  ;;  %v1006_v7 = vmul.f32 %v910_v57, %v910_v57  ;;  %v1040_v36 = vmul.f32 %v944_v26, %v944_v26  ;;  %v936_v57 = vld [vmem:[%s2005_s9 + $0x590] sm:$0xff]  ;;  %v1017_v26 = vmul.f32 %v921_v22, %v921_v22 }
 0x240   : > { %v1009_v8 = vmul.f32 %v913_v58, %v913_v58  ;;  %v1032_v62 = vmul.f32 %v936_v57, %v936_v57  ;;  %v908_v57 = vld [vmem:[%s2005_s9 + $0x4b0] sm:$0xff] }
 0x241   : > { %1149 = vmatpush1.bf16.xpose.msra.mxu1 %v1058_v34  ;;  %v855_v34 = vld [vmem:[%s2005_s9 + $0x308] sm:$0xff] }
 0x242   : > { %1150 = vmatprep.subr.bf16.mxu1 %v1056_v35  ;;  %v858_v35 = vld [vmem:[%s2005_s9 + $0x320] sm:$0xff]  ;;  %v951_v47 = vmul.f32 %v855_v34, %v855_v34  ;;  %v1075_v18 = vpack.c.bf16 %v1009_v8, %v1006_v7  ;;  %v856_v34 = vld [vmem:[%s2005_s9 + $0x310] sm:$0xff]  ;;  %v1086_v6 = vpack.c.bf16 %v1032_v62, %v1029_v61  ;;  %v935_v8 = vld [vmem:[%s2005_s9 + $0x588] sm:$0xff]  ;;  %v1004_v61 = vmul.f32 %v908_v57, %v908_v57 }
 0x243   : > { %v954_v49 = vmul.f32 %v858_v35, %v858_v35  ;;  %v859_v35 = vld [vmem:[%s2005_s9 + $0x328] sm:$0xff]  ;;  %v952_v45 = vmul.f32 %v856_v34, %v856_v34  ;;  %v932_v7 = vld [vmem:[%s2005_s9 + $0x570] sm:$0xff] }
 0x245   : > { %v1047_v60 = vpack.c.bf16 %v954_v49, %v951_v47  ;;  %v955_v47 = vmul.f32 %v859_v35, %v859_v35  ;;  %v1091_v49 = vpack.c.bf16 %v1043_v37, %v1040_v36 }
 0x246   : > { %1599 = vmatpush3.bf16.xpose.msra.mxu0 %v1107_v23  ;;  %v907_v23 = vld [vmem:[%s2005_s9 + $0x4a8] sm:$0xff] }
 0x247   : > { %1624 = vmatprep.subr.msk.bf16.mxu0 %vm557_vm0, %v1081_v24  ;;  %v1046_v24 = vpack.c.bf16 %v953_v12, %v950_v11  ;;  %v1003_v33 = vmul.f32 %v907_v23, %v907_v23  ;;  %v1048_v58 = vpack.c.bf16 %v955_v47, %v952_v45  ;;  %v1028_v11 = vmul.f32 %v932_v7, %v932_v7  ;;  %v924_v23 = vld [vmem:[%s2005_s9 + $0x530] sm:$0xff] }
 0x248   : > { %v1031_v12 = vmul.f32 %v935_v8, %v935_v8  ;;  %v1020_v1 = vmul.f32 %v924_v23, %v924_v23  ;;  %v912_v45 = vld [vmem:[%s2005_s9 + $0x4d0] sm:$0xff]  ;;  %v902_v8 = vld [vmem:[%s2005_s9 + $0x480] sm:$0xff] }
 0x249   : > { %1151 = vmatpush1.bf16.xpose.msra.mxu1 %v1055_v63  ;;  %v945_v63 = vld [vmem:[%s2005_s9 + $0x5d8] sm:$0xff]  ;;  %v1072_v43 = vpack.c.bf16 %v1003_v33, %v1000_v32  ;;  %v915_v32 = vld [vmem:[%s2005_s9 + $0x4e8] sm:$0xff]  ;;  %v918_v33 = vld [vmem:[%s2005_s9 + $0x500] sm:$0xff] }
 0x24a   : > { %1152 = vmatprep.subr.bf16.mxu1 %v1053_v2  ;;  %v948_v2 = vld [vmem:[%s2005_s9 + $0x5f0] sm:$0xff]  ;;  %v1041_v13 = vmul.f32 %v945_v63, %v945_v63  ;;  %v1095_v63 = vsel %vm557_vm0, %v1048_v58, 0  ;;  %v1080_v27 = vpack.c.bf16 %v1020_v1, %v1017_v26  ;;  %v1011_v36 = vmul.f32 %v915_v32, %v915_v32  ;;  %v911_v58 = vld [vmem:[%s2005_s9 + $0x4c8] sm:$0xff] }
 0x24b   : > { %v1044_v14 = vmul.f32 %v948_v2, %v948_v2  ;;  %v1014_v37 = vmul.f32 %v918_v33, %v918_v33  ;;  %v1007_v62 = vmul.f32 %v911_v58, %v911_v58 }
 0x24d   : > { %v1092_v25 = vpack.c.bf16 %v1044_v14, %v1041_v13  ;;  %v1023_v13 = vmul.f32 %v927_v9, %v927_v9  ;;  %v1026_v14 = vmul.f32 %v930_v10, %v930_v10  ;;  %v905_v9 = vld [vmem:[%s2005_s9 + $0x498] sm:$0xff]  ;;  %v998_v10 = vmul.f32 %v902_v8, %v902_v8 }
 0x24e   : > { %1601 = vmatpush3.bf16.xpose.msra.mxu0 %v1104_v51 }
 0x24f   : > { %1625 = vmatprep.subr.msk.bf16.mxu0 %vm557_vm0, %v1078_v53  ;;  %v938_v53 = vld [vmem:[%s2005_s9 + $0x5a0] sm:$0xff] }
 0x251   : > { %1153 = vmatpush1.bf16.xpose.msra.mxu1 %v1052_v29  ;;  %v942_v29 = vld [vmem:[%s2005_s9 + $0x5c0] sm:$0xff] }
 0x252   : > { %1154 = vmatprep.subr.bf16.mxu1 %v1050_v31  ;;  %v1051_v31 = vpack.c.bf16 %v961_v21, %v958_v20  ;;  %v1038_v39 = vmul.f32 %v942_v29, %v942_v29  ;;  %v926_v20 = vld [vmem:[%s2005_s9 + $0x540] sm:$0xff]  ;;  %v929_v21 = vld [vmem:[%s2005_s9 + $0x558] sm:$0xff]  ;;  %v920_v29 = vld [vmem:[%s2005_s9 + $0x510] sm:$0xff] }
 0x253   : > { %v1016_v34 = vmul.f32 %v920_v29, %v920_v29 }
 0x254   : > { %v1098_v41 = vsel %vm557_vm0, %v1051_v31, 0  ;;  %v1089_v51 = vpack.c.bf16 %v1038_v39, %v1035_v38  ;;  %v923_v31 = vld [vmem:[%s2005_s9 + $0x528] sm:$0xff]  ;;  %v1077_v39 = vpack.c.bf16 %v1014_v37, %v1011_v36 }
 0x255   : > { %v1019_v35 = vmul.f32 %v923_v31, %v923_v31 }
 0x256   : > { %1603 = vmatpush3.bf16.xpose.msra.mxu0 %v1101_v16  ;;  %v1085_v16 = vpack.c.bf16 %v1031_v12, %v1028_v11  ;;  %v1001_v11 = vmul.f32 %v905_v9, %v905_v9 }
 0x257   : > { %1626 = vmatprep.subr.msk.bf16.mxu0 %vm557_vm0, %v1075_v18  ;;  %v1083_v18 = vpack.c.bf16 %v1026_v14, %v1023_v13  ;;  %v1079_v38 = vpack.c.bf16 %v1019_v35, %v1016_v34  ;;  %v805_v13 = vlaneseq }
 0x258   : > { %v1070_v12 = vpack.c.bf16 %v1001_v11, %v998_v10 }
 0x259   : > { %1155 = vmatpush1.bf16.xpose.msra.mxu1 %v1049_v59  ;;  %v1034_v59 = vmul.f32 %v938_v53, %v938_v53  ;;  %v1008_v53 = vmul.f32 %v912_v45, %v912_v45  ;;  %v806_v14 = vand.u32 127, %v805_v13 }
 0x25a   : > { %1156 = vmatprep.subr.bf16.mxu1 %v1047_v60  ;;  %v1037_v60 = vmul.f32 %v941_v55, %v941_v55 }
 0x25c   : > { %v1088_v2 = vpack.c.bf16 %v1037_v60, %v1034_v59  ;;  %v903_v59 = vld [vmem:[%s2005_s9 + $0x488] sm:$0xff]  ;;  %v906_v60 = vld [vmem:[%s2005_s9 + $0x4a0] sm:$0xff] }
 0x25e   : > { %1605 = vmatpush3.bf16.xpose.msra.mxu0 %v1098_v41  ;;  %v917_v41 = vld [vmem:[%s2005_s9 + $0x4f8] sm:$0xff] }
 0x25f   : > { %1627 = vmatprep.subr.msk.bf16.mxu0 %vm557_vm0, %v1072_v43  ;;  %v909_v43 = vld [vmem:[%s2005_s9 + $0x4b8] sm:$0xff] }
 0x261   : > { %1157 = vmatpush1.bf16.xpose.msra.mxu1 %v1046_v24  ;;  %v1022_v24 = vmul.f32 %v926_v20, %v926_v20 }
 0x262   : > { %1158 = vmatprep.subr.bf16.mxu1 %v1092_v25  ;;  %v1025_v25 = vmul.f32 %v929_v21, %v929_v21 }
 0x266   : > { %1607 = vmatpush3.bf16.xpose.msra.mxu0 %v1095_v63  ;;  %v999_v63 = vmul.f32 %v903_v59, %v903_v59 }
 0x269   : > { %1159 = vmatpush2.bf16.xpose.msra.mxu1 %v1091_v49  ;;  %v1013_v49 = vmul.f32 %v917_v41, %v917_v41 }
 0x26a   : > { %1160 = vmatprep.subr.bf16.mxu1 %v1089_v51  ;;  %v1005_v51 = vmul.f32 %v909_v43, %v909_v43 }
 0x26c   : > { %v1074_v56 = vpack.c.bf16 %v1008_v53, %v1005_v51 }
 0x26d   : > { %1609 = vmatmul.mubr.msk.bf16.vlgmr.msra.gmra.mxu0 %vm557_vm0, %v2000_v0  ;;  %v1082_v0 = vpack.c.bf16 %v1025_v25, %v1022_v24 }
 0x26e   : > { %1610 = vmatprep.mubr.msk.bf16.mxu0 %vm557_vm0, %v2112_v17 }
 0x271   : > { %1161 = vmatpush2.bf16.xpose.msra.mxu1 %v1088_v2  ;;  %v1002_v2 = vmul.f32 %v906_v60, %v906_v60 }
 0x272   : > { %1162 = vmatprep.subr.bf16.mxu1 %v1086_v6  ;;  %v1073_v6 = vpack.c.bf16 %v1007_v62, %v1004_v61 }
 0x273   : > { %v1071_v7 = vpack.c.bf16 %v1002_v2, %v999_v63 }
 0x275   : > { %1611 = vmatmul.mubr.msk.bf16.gmra.mxu0 %vm557_vm0, %v2112_v17  ;;  %v914_v17 = vld [vmem:[%s2005_s9 + $0x4e0] sm:$0xff] }
 0x276   : > { %v1010_v47 = vmul.f32 %v914_v17, %v914_v17 }
 0x278   : > { %v1076_v55 = vpack.c.bf16 %v1013_v49, %v1010_v47 }
 0x279   : > { %1163 = vmatpush2.bf16.xpose.msra.mxu1 %v1085_v16  ;;  %v807_v16 = vadd.s32 128, %v806_v14 }
 0x27a   : > { %1164 = vmatprep.subr.bf16.mxu1 %v1083_v18  ;;  %v809_v18 = vstv %s1557_s5 }
 0x27b   : > { %v810_v21 = vadd.s32 %v809_v18, %v806_v14  ;;  %v811_v22 = vadd.s32 %v809_v18, %v807_v16 }
 0x27d   : > { %vm812_vm3 = vcmp.lt.s32.totalorder %v810_v21, 520  ;;  %vm813_vm4 = vcmp.lt.s32.totalorder %v811_v22, 520 }
 0x281   : > { %1165 = vmatpush2.bf16.xpose.msra.mxu1 %v1082_v0 }
 0x282   : > { %1166 = vmatprep.subr.bf16.mxu1 %v1080_v27 }
 0x289   : > { %1167 = vmatpush2.bf16.xpose.msra.mxu1 %v1079_v38 }
 0x28a   : > { %1168 = vmatprep.subr.bf16.mxu1 %v1077_v39 }
 0x291   : > { %1169 = vmatpush2.bf16.xpose.msra.mxu1 %v1076_v55 }
 0x292   : > { %1170 = vmatprep.subr.bf16.mxu1 %v1074_v56 }
 0x299   : > { %1171 = vmatpush2.bf16.xpose.msra.mxu1 %v1073_v6 }
 0x29a   : > { %1172 = vmatprep.subr.bf16.mxu1 %v1071_v7 }
 0x2a1   : > { %1173 = vmatpush2.bf16.xpose.msra.mxu1 %v1070_v12 }
 0x2a8   : > { %1175 = vmatmul.mubr.bf16.vlgmr.msra.gmra.mxu1 %v2141_v3 }
 0x2a9   : > { %1184 = vmatprep.mubr.bf16.mxu1 %v2146_v4 }
 0x2b0   : > { %1185 = vmatmul.mubr.bf16.gmra.mxu1 %v2153_v5 }
 0x2b1   : > { %v2351_v20 = vpop.permute.xlu0 %779 }
 0x2b2   : > { %v797_v23 = vsub.f32 %v2159_v40, %v2351_v20  ;;  %v798_v24 = vsub.f32 %v2165_v42, %v2351_v20  ;;  %v2359_v5 = vpop.permute.xlu1 %789 }
 0x2b3   : > { %v801_v26 = vsub.f32 %v2177_v48, %v2359_v5  ;;  %v802_v1 = vsub.f32 %v2181_v50, %v2359_v5 }
 0x2b4   : > { %v814_v3 = vsel %vm812_vm3, %v797_v23, 0.0  ;;  %v815_v4 = vsel %vm813_vm4, %v798_v24, 0.0 }
 0x2b5   : > { %v822_v25 = vadd.f32 %v815_v4, %v814_v3  ;;  %v818_v40 = vsel %vm812_vm3, %v801_v26, 0.0  ;;  %v819_v42 = vsel %vm813_vm4, %v802_v1, 0.0  ;;  %v2369_v27 = vpop.permute.xlu0 %784  ;;  %v834_v39 = vmul.f32 %v814_v3, %v814_v3 }
 0x2b6   : > { %v2367_v0 = vpop.permute.xlu1 %794  ;;  %v828_v29 = vadd.f32 %v819_v42, %v818_v40  ;;  %v799_v48 = vsub.f32 %v2169_v44, %v2369_v27  ;;  %v800_v50 = vsub.f32 %v2173_v46, %v2369_v27  ;;  %v1280_v44 = vadd.s32 256, %v806_v14 }
 0x2b7   : > { %823 = vadd.xlane.f32.xlu0 %v822_v25  ;;  %v803_v31 = vsub.f32 %v2185_v52, %v2367_v0  ;;  %v804_v32 = vsub.f32 %v2189_v54, %v2367_v0  ;;  %v835_v17 = vmul.f32 %v815_v4, %v815_v4  ;;  %v1281_v46 = vadd.s32 256, %v807_v16 }
 0x2b8   : > { %v816_v35 = vsel %vm812_vm3, %v799_v48, 0.0  ;;  %v817_v36 = vsel %vm813_vm4, %v800_v50, 0.0  ;;  %v2383_v43 = vadd.s32 %v1280_v44, %v809_v18  ;;  %v838_v49 = vmul.f32 %v818_v40, %v818_v40 }
 0x2b9   : > { %v820_v33 = vsel %vm812_vm3, %v803_v31, 0.0  ;;  %v821_v34 = vsel %vm813_vm4, %v804_v32, 0.0  ;;  %v825_v52 = vadd.f32 %v817_v36, %v816_v35  ;;  %v836_v54 = vmul.f32 %v816_v35, %v816_v35 }
 0x2ba   : > { %v831_v37 = vadd.f32 %v821_v34, %v820_v33  ;;  %v837_v38 = vmul.f32 %v817_v36, %v817_v36  ;;  %v842_v45 = vadd.f32 %v835_v17, %v834_v39  ;;  %v2385_v47 = vadd.s32 %v1281_v46, %v809_v18 }
 0x2bb   : > { %829 = vadd.xlane.f32.xlu0 %v828_v29  ;;  %826 = vadd.xlane.f32.xlu1 %v825_v52  ;;  %v839_v51 = vmul.f32 %v819_v42, %v819_v42  ;;  %v840_v53 = vmul.f32 %v820_v33, %v820_v33  ;;  %v841_v55 = vmul.f32 %v821_v34, %v821_v34  ;;  %vm1284_vm5 = vcmp.lt.s32.totalorder %v2383_v43, 520 }
 0x2bc   : > { %v845_v41 = vadd.f32 %v837_v38, %v836_v54  ;;  %vm1285_vm6 = vcmp.lt.s32.totalorder %v2385_v47, 520 }
 0x2bd   : > { %v2387_v56 = vadd.f32 %v839_v51, %v838_v49  ;;  %v2389_v57 = vadd.f32 %v841_v55, %v840_v53 }
 0x2bf   : > { %832 = vadd.xlane.f32.xlu0 %v831_v37  ;;  %843 = vadd.xlane.f32.xlu1 %v842_v45 }
 0x2c3   : > { %846 = vadd.xlane.f32.xlu0 %v845_v41 }
 0x32d   : > { %v1229_v58 = vpop.f32.mrf.mxu0 }
 0x32f   : > { %v1231_v59 = vpop.f32.mrf.mxu0 }
 0x331   : > { %v1233_v60 = vpop.f32.mrf.mxu0 }
 0x333   : > { %v1235_v62 = vpop.f32.mrf.mxu0 }
 0x335   : > { %v1239_v9 = vpop.f32.mrf.mxu0 }
 0x337   : > { %v1241_v16 = vpop.f32.mrf.mxu0 }
 0x339   : > { %v1243_v4 = vpop.f32.mrf.mxu0 }
 0x33b   : > { %v1245_v31 = vpop.f32.mrf.mxu0 }
 0x368   : > { %v1176_v61 = vpop.f32.mrf.mxu1 }
 0x369   : > { %v1177_v63 = vadd.f32 1e-12, %v1176_v61 }
 0x36a   : > { %v1178_v2 = vpop.f32.mrf.mxu1 }
 0x36b   : > { %v1230_v6 = vadd.f32 %v1229_v58, %v1177_v63  ;;  %v1179_v7 = vadd.f32 1e-12, %v1178_v2 }
 0x36c   : > { %v1180_v8 = vpop.f32.mrf.mxu1 }
 0x36d   : > { %1749 = vlog2.f32 %v1230_v6  ;;  %v1232_v10 = vadd.f32 %v1231_v59, %v1179_v7  ;;  %v1181_v11 = vadd.f32 1e-12, %v1180_v8 }
 0x36e   : > { %v1182_v12 = vpop.f32.mrf.mxu1 }
 0x36f   : > { %1751 = vlog2.f32 %v1232_v10  ;;  %v1234_v13 = vadd.f32 %v1233_v60, %v1181_v11  ;;  %v1183_v14 = vadd.f32 1e-12, %v1182_v12 }
 0x370   : > { %v1186_v18 = vpop.f32.mrf.mxu1 }
 0x371   : > { %1753 = vlog2.f32 %v1234_v13  ;;  %v1236_v21 = vadd.f32 %v1235_v62, %v1183_v14  ;;  %v1187_v22 = vadd.f32 1e-12, %v1186_v18 }
 0x372   : > { %v1188_v23 = vpop.f32.mrf.mxu1 }
 0x373   : > { %1755 = vlog2.f32 %v1236_v21  ;;  %v1240_v24 = vadd.f32 %v1239_v9, %v1187_v22  ;;  %v1189_v3 = vadd.f32 1e-12, %v1188_v23 }
 0x374   : > { %v1190_v25 = vpop.f32.mrf.mxu1 }
 0x375   : > { %1757 = vlog2.f32 %v1240_v24  ;;  %v1242_v26 = vadd.f32 %v1241_v16, %v1189_v3  ;;  %v1191_v1 = vadd.f32 1e-12, %v1190_v25 }
 0x376   : > { %v1192_v40 = vpop.f32.mrf.mxu1 }
 0x377   : > { %1759 = vlog2.f32 %v1242_v26  ;;  %v1244_v42 = vadd.f32 %v1243_v4, %v1191_v1  ;;  %v1193_v29 = vadd.f32 1e-12, %v1192_v40  ;;  %v827_v26 = vpop.xlane.xlu1 %826 }
 0x379   : > { %1761 = vlog2.f32 %v1244_v42  ;;  %v1246_v32 = vadd.f32 %v1245_v31, %v1193_v29 }
 0x37a   : > { %v1750_v48 = vpop.eup %1749 }
 0x37b   : > { %1763 = vlog2.f32 %v1246_v32  ;;  %v1249_v50 = vmul.f32 0.6931472, %v1750_v48  ;;  %v844_v1 = vpop.xlane.xlu1 %843 }
 0x37c   : > { %v1752_v33 = vpop.eup %1751 }
 0x37d   : > { %v1251_v34 = vmul.f32 0.6931472, %v1752_v33  ;;  %1264 = vst [vmem:[%s2161_s4 + $0x10] sm:$0xff] %v1249_v50  ;;  %v1272_v35 = vsub.f32 %v1249_v50, %v2351_v20 }
 0x37e   : > { %v1754_v36 = vpop.eup %1753 }
 0x37f   : > { %1265 = vst [vmem:[%s2161_s4 + $0x18] sm:$0xff] %v1251_v34  ;;  %v1273_v37 = vsub.f32 %v1251_v34, %v2351_v20  ;;  %v1286_v52 = vsel %vm1284_vm5, %v1272_v35, 0.0  ;;  %v1253_v54 = vmul.f32 0.6931472, %v1754_v36 }
 0x380   : > { %v1756_v38 = vpop.eup %1755  ;;  %v1310_v45 = vmul.f32 %v1286_v52, %v1286_v52 }
 0x381   : > { %v1287_v39 = vsel %vm1285_vm6, %v1273_v37, 0.0  ;;  %v1255_v44 = vmul.f32 0.6931472, %v1756_v38  ;;  %1266 = vst [vmem:[%s2161_s4 + $0x30] sm:$0xff] %v1253_v54  ;;  %v1274_v17 = vsub.f32 %v1253_v54, %v2369_v27 }
 0x382   : > { %v1758_v41 = vpop.eup %1757  ;;  %v1294_v46 = vadd.f32 %v1287_v39, %v1286_v52  ;;  %v1311_v49 = vmul.f32 %v1287_v39, %v1287_v39 }
 0x383   : > { %1267 = vst [vmem:[%s2161_s4 + $0x38] sm:$0xff] %v1255_v44  ;;  %v1275_v20 = vsub.f32 %v1255_v44, %v2369_v27  ;;  %v1288_v51 = vsel %vm1284_vm5, %v1274_v17, 0.0  ;;  %v1257_v53 = vmul.f32 0.6931472, %v1758_v41 }
 0x384   : > { %v1760_v55 = vpop.eup %1759  ;;  %1295 = vadd.xlane.f32.xlu1 %v1294_v46  ;;  %v1318_v58 = vadd.f32 %v1311_v49, %v1310_v45  ;;  %v1312_v2 = vmul.f32 %v1288_v51, %v1288_v51 }
 0x385   : > { %v1289_v59 = vsel %vm1285_vm6, %v1275_v20, 0.0  ;;  %v1259_v60 = vmul.f32 0.6931472, %v1760_v55  ;;  %1268 = vst [vmem:[%s2161_s4 + $0x50] sm:$0xff] %v1257_v53  ;;  %v1276_v61 = vsub.f32 %v1257_v53, %v2359_v5 }
 0x386   : > { %v1762_v62 = vpop.eup %1761  ;;  %v1297_v63 = vadd.f32 %v1289_v59, %v1288_v51  ;;  %v1313_v27 = vmul.f32 %v1289_v59, %v1289_v59 }
 0x387   : > { %1269 = vst [vmem:[%s2161_s4 + $0x58] sm:$0xff] %v1259_v60  ;;  %v1277_v6 = vsub.f32 %v1259_v60, %v2359_v5  ;;  %v1290_v7 = vsel %vm1284_vm5, %v1276_v61, 0.0  ;;  %v1261_v8 = vmul.f32 0.6931472, %v1762_v62 }
 0x388   : > { %v1764_v9 = vpop.eup %1763  ;;  %1298 = vadd.xlane.f32.xlu0 %v1297_v63  ;;  %v1321_v10 = vadd.f32 %v1313_v27, %v1312_v2  ;;  %v1314_v16 = vmul.f32 %v1290_v7, %v1290_v7 }
 0x389   : > { %v1263_v11 = vmul.f32 0.6931472, %v1764_v9  ;;  %v1291_v12 = vsel %vm1285_vm6, %v1277_v6, 0.0  ;;  %1270 = vst [vmem:[%s2161_s4 + $0x70] sm:$0xff] %v1261_v8  ;;  %v1278_v13 = vsub.f32 %v1261_v8, %v2367_v0 }
 0x38a   : > { %v1300_v14 = vadd.f32 %v1291_v12, %v1290_v7  ;;  %v1315_v18 = vmul.f32 %v1291_v12, %v1291_v12 }
 0x38b   : > { %1271 = vst [vmem:[%s2161_s4 + $0x78] sm:$0xff] %v1263_v11  ;;  %v1279_v5 = vsub.f32 %v1263_v11, %v2367_v0  ;;  %v1292_v21 = vsel %vm1284_vm5, %v1278_v13, 0.0  ;;  %v824_v0 = vpop.xlane.xlu0 %823 }
 0x38c   : > { %1301 = vadd.xlane.f32.xlu1 %v1300_v14  ;;  %v1324_v22 = vadd.f32 %v1315_v18, %v1314_v16  ;;  %v1316_v3 = vmul.f32 %v1292_v21, %v1292_v21 }
 0x38d   : > { %v1293_v23 = vsel %vm1285_vm6, %v1279_v5, 0.0 }
 0x38e   : > { %v1303_v24 = vadd.f32 %v1293_v23, %v1292_v21  ;;  %v1317_v4 = vmul.f32 %v1293_v23, %v1293_v23 }
 0x38f   : > { %v830_v43 = vpop.xlane.xlu0 %829 }
 0x390   : > { %1304 = vadd.xlane.f32.xlu0 %v1303_v24  ;;  %849 = vadd.xlane.f32.xlu1 %v2387_v56  ;;  %v1327_v25 = vadd.f32 %v1317_v4, %v1316_v3 }
 0x393   : > { %v833_v47 = vpop.xlane.xlu0 %832 }
 0x394   : > { %852 = vadd.xlane.f32.xlu0 %v2389_v57  ;;  %1319 = vadd.xlane.f32.xlu1 %v1318_v58 }
 0x397   : > { %v847_v40 = vpop.xlane.xlu0 %846 }
 0x398   : > { %1322 = vadd.xlane.f32.xlu0 %v1321_v10  ;;  %1325 = vadd.xlane.f32.xlu1 %v1324_v22 }
 0x39c   : > { %1328 = vadd.xlane.f32.xlu0 %v1327_v25 }
 0x40d   : > { %v1296_v42 = vpop.xlane.xlu1 %1295 }
 0x40e   : > { %v1306_v29 = vadd.f32 %v1296_v42, %v824_v0 }
 0x410   : > { %v1338_v56 = vadd.f32 %v1306_v29, %v2267_v15 }
 0x411   : > { %v1299_v57 = vpop.xlane.xlu0 %1298 }
 0x412   : > { %1343 = vst.msk [vmem:[%s1995_s20] sm:$0xff] %vm1342_vm7, %v1338_v56  ;;  %v1307_v31 = vadd.f32 %v1299_v57, %v827_v26 }
 0x414   : > { %v1339_v32 = vadd.f32 %v1307_v31, %v2278_v28 }
 0x415   : > { %v1302_v48 = vpop.xlane.xlu1 %1301 }
 0x416   : > { %1344 = vst.msk [vmem:[%s1995_s20 + $0x8] sm:$0xff] %vm1342_vm7, %v1339_v32  ;;  %v1308_v50 = vadd.f32 %v1302_v48, %v830_v43 }
 0x418   : > { %v1340_v33 = vadd.f32 %v1308_v50, %v2270_v19 }
 0x419   : > { %v850_v34 = vpop.xlane.xlu1 %849  ;;  %v1305_v35 = vpop.xlane.xlu0 %1304  ;;  %v1347_v54 = vld [vmem:[%s1995_s20] sm:$0xff] }
 0x41a   : > { %1345 = vst.msk [vmem:[%s1995_s20 + $0x10] sm:$0xff] %vm1342_vm7, %v1340_v33  ;;  %v1309_v15 = vadd.f32 %v1305_v35, %v833_v47 }
 0x41c   : > { %v1341_v36 = vadd.f32 %v1309_v15, %v2281_v30 }
 0x41d   : > { %v1320_v37 = vpop.xlane.xlu1 %1319  ;;  %v853_v52 = vpop.xlane.xlu0 %852  ;;  %v1348_v41 = vld [vmem:[%s1995_s20 + $0x8] sm:$0xff] }
 0x41e   : > { %1346 = vst.msk [vmem:[%s1995_s20 + $0x18] sm:$0xff] %vm1342_vm7, %v1341_v36  ;;  %v1330_v28 = vadd.f32 %v1320_v37, %v844_v1 }
 0x420   : > { %v1351_v19 = vadd.f32 %v1347_v54, %v1330_v28 }
 0x421   : > { %v1326_v38 = vpop.xlane.xlu1 %1325  ;;  %v1323_v39 = vpop.xlane.xlu0 %1322  ;;  %v1349_v30 = vld [vmem:[%s1995_s20 + $0x10] sm:$0xff] }
 0x422   : > { %1356 = vst.msk [vmem:[%s1995_s20] sm:$0xff] %vm1355_vm8, %v1351_v19  ;;  %v1332_v44 = vadd.f32 %v1326_v38, %v850_v34  ;;  %v1331_v17 = vadd.f32 %v1323_v39, %v847_v40 }
 0x424   : > { %v1353_v46 = vadd.f32 %v1349_v30, %v1332_v44  ;;  %v1352_v45 = vadd.f32 %v1348_v41, %v1331_v17 }
 0x425   : > { %v1329_v49 = vpop.xlane.xlu0 %1328  ;;  %v1350_v51 = vld [vmem:[%s1995_s20 + $0x18] sm:$0xff] }
 0x426   : > { %1358 = vst.msk [vmem:[%s1995_s20 + $0x10] sm:$0xff] %vm1355_vm8, %v1353_v46  ;;  %1357 = vst.msk [vmem:[%s1995_s20 + $0x8] sm:$0xff] %vm1355_vm8, %v1352_v45  ;;  %v1333_v20 = vadd.f32 %v1329_v49, %v853_v52  ;;  %1376 = sbr.rel (!%p1962_p5) target bundleno = 1097 (0x449), region = 36 }
 0x428   : > { %v1354_v53 = vadd.f32 %v1350_v51, %v1333_v20 }
 0x42a   : > { %1359 = vst.msk [vmem:[%s1995_s20 + $0x18] sm:$0xff] %vm1355_vm8, %v1354_v53 }
 0x42b   : > { %s2582_s11 = smov (!%p1379_p3, %s1378_s11), 4 }
 0x42c   : > { %s2461_s9 = sshll.u32 %s2582_s11, 9 }
 0x42d   : > { %s1383_s23 = ssub.s32 2048, %s2461_s9 }
 0x42e   : > { %1384 = vsyncadd %s2453_s6, %s1383_s23  ;;  %p1563_p4 = scmp.ne.s32.totalorder %s2461_s9, 0  ;;  %s1631_s20 = smul.u32 20, %s1857_s17 }
 0x42f   : > { %s1632_s15 = smul.u32 40, %s1853_s16  ;;  %s1565_s27 = sshll.u32 %s2582_s11, 3 }
 0x430   : > { %s1387_s24 = sadd.s32 %s1631_s20, %s1561_s7  ;;  %s1394_s14 = sshll.u32 %s2161_s4, 4  ;;  %s2470_s14 = int_to_ptr.vmem [resolvable:$true] %s1394_s14 }
 0x431   : > { %s1389_s18 = sadd.s32 %s1632_s15, %s1387_s24  ;;  %s1765_s22 = scalar_lea.vmem %s2470_s14, %s2461_s9 }
 0x432   : > { %s1564_s19 = sshll.u32 %s1389_s18, 7  ;;  %p1766_p5 = scmp.ne.s32.totalorder %s2470_s14, %s1765_s22 }
 0x433   : > { %s2475_s10 = scalar_lea.hbm %s2539_s2, %s1564_s19  ;;  %s1877_s16 = smov [#allocation2]  }
 0x434   : > { %p1767_p6 = pnand %p1766_p5, %p1563_p4  ;;  %s1769_s17 = sshll.u32 %s1877_s16, 4  ;;  %s1770_s17 = int_to_ptr.vmem [resolvable:$false] %s1769_s17 }
 0x435   : > { %s1771_s25 = scalar_lea.vmem %s1770_s17, 4096  ;;  %p1772_p9 = scmp.lt.s32.totalorder %s2470_s14, %s1770_s17 }
 0x436   : > { %p1768_p8 = pneg %p1767_p6  ;;  %p1773_p10 = scmp.lt.s32.totalorder %s1771_s25, %s1765_s22 }
 0x438   : > { %p1774_p11 = por %p1773_p10, %p1772_p9 }
 0x43a   : > { %p1775_p12 = pnand %p1774_p11, %p1768_p8 }
 0x43c   : > { %1778 = shalt.err (!%p1775_p12)
}
 0x43d   : > { %s1779_s29 = scalar_lea.hbm %s2475_s10, %s2461_s9  ;;  %s1783_s5 = scalar_lea.hbm %s2539_s2, 10240 }
 0x43e   : > { %p1780_p13 = scmp.ne.s32.totalorder %s2475_s10, %s1779_s29  ;;  %p1784_p2 = scmp.lt.s32.totalorder %s2475_s10, %s2539_s2 }
 0x43f   : > { %p1785_p3 = scmp.lt.s32.totalorder %s1783_s5, %s1779_s29 }
 0x440   : > { %p1781_p0 = pnand %p1780_p13, %p1563_p4 }
 0x441   : > { %p1786_p5 = por %p1785_p3, %p1784_p2 }
 0x442   : > { %p1782_p1 = pneg %p1781_p0 }
 0x444   : > { %p1787_p6 = pnand %p1786_p5, %p1782_p1 }
 0x446   : > { %1790 = shalt.err (!%p1787_p6)
}
 0x447   : > { %s1878_s20 = smov 512   ;;  %s1879_s15 = smov 640  }
 0x448   : > { %1400 = dma.vmem_to_hbm [thread:$0]  (%p1563_p4), %s2470_s14, %s2461_s9, %s2475_s10, %s2453_s6, %s1878_s20, %s1879_s15, %s1565_s27  }
 0x449 PF: > { %p1638_p8 = scmp.ge.s32.totalorder %s1873_s21, 2  ;;  %s1412_s24 = sand.u32 1, %s1837_s12  }
 0x44a   : > { %s1413_s18 = scalar_lea.sflag [#allocation3], %s1412_s24 }
 0x44b   : > { %p1635_p9 = pnand %p1638_p8, %p1969_p7 }
 0x44d   : > { %p1636_p10 = pneg %p1635_p9 }
 0x44f   : > { %1832 = dma.done.wait (%p1636_p10), %s1413_s18, 2048  }
 0x450   : > { %1834 = vsyncadd (%p1636_p10), %s1413_s18, 4294965248  ;;  %s17_s21 = sadd.s32 1, %s1873_s21   ;;  %s2558_s19 = sld [smem:[#allocation5_spill]] }
 0x451   : > { %p14_p11 = scmp.ge.s32.totalorder %s17_s21, 10   ;;  %s2559_s14 = sld [smem:[#allocation12_spill]] }
 0x452   : > { %s2560_s15 = sld [smem:[#allocation6_spill]]  ;;  %s2566_s12 = smov %s1841_s13 }
 0x453   : > { %s2561_s16 = sld [smem:[#allocation7_spill]] }
 0x454   : > { %s2562_s17 = sld [smem:[#allocation8_spill]] }
 0x455   : > { %s2563_s18 = sld [smem:[#allocation9_spill]] }
 0x456   : > { %s2564_s6 = sld [smem:[#allocation10_spill]]  ;;  %s2567_s13 = smov %s2558_s19 }
 0x457   : > { %s2565_s20 = sld [smem:[#allocation11_spill]] }
 0x458   :  { %16 = sbr.rel (!%p14_p11) target bundleno = 6 (0x6), region = 79 }
 0x45c   : > { %s2568_s19 = smov %s2564_s6 }
 0x45d   :  { %1430 = vsyncpa [#allocation3], 1 }
 0x45e   :  { %1432 = vsyncpa [#allocation3 + $0x1], 1 }

// kernel: _nlme_impl.3
= control target key start
LH: loop header
LB: loop body
LE: loop exit
PB: predicated region body
PF: predicated region fallthrough
CT: control target
= control target key end

     0   :  { %8 = vsyncpa [#allocation3], 0  ;;  %s1116_s0 = inlined_call_operand.hbm [shape: f32[2,2,32,520], index: 0, kind: input, shape index: {}, may-alias: {0,3}]   ;;  %s1117_s1 = inlined_call_operand.vmem [shape: f32[2,32,1], index: 1, kind: input, shape index: {}]   ;;  %s1118_s2 = inlined_call_operand.vmem [shape: f32[2,32,1], index: 2, kind: input, shape index: {}]   ;;  %s1119_s3 = inlined_call_operand.hbm [shape: f32[2,2,32,520], index: 3, kind: output, shape index: {}, may-alias: {0,3}]  }
   0x1   :  { %10 = vsyncpa [#allocation3 + $0x1], 0 }
   0x2   :  { %11 = vsyncpa [#allocation4], 0 }
   0x3   :  { %13 = vsyncpa [#allocation4 + $0x1], 0  ;;  %s838_s12 = smov 0   ;;  %s840_s13 = smov 0  }
   0x4   :  { %s842_s14 = smov 0   ;;  %s844_s15 = smov 0  }
   0x5   :  { %s846_s16 = smov 0   ;;  %s848_s17 = smov 0  }
   0x6   :  { %s850_s18 = smov 0   ;;  %s852_s19 = smov 0  }
   0x7   :  { %s854_s20 = smov 0   ;;  %s856_s21 = smov 0  }
   0x8 LB: > { %1128 = sst [smem:[#allocation8_spill]] %s773_s12  ;;  %s538_s22 = sadd.s32 4294967295, %s809_s21   ;;  %s809_s21 = sphi %s856_s21, %s19_s21   ;;  %s805_s20 = sphi %s854_s20, %s1149_s20   ;;  %s801_s19 = sphi %s852_s19, %s1153_s19   ;;  %s797_s18 = sphi %s850_s18, %s1147_s18   ;;  %s793_s17 = sphi %s848_s17, %s1146_s17   ;;  %s789_s16 = sphi %s846_s16, %s1152_s16   ;;  %s785_s15 = sphi %s844_s15, %s1145_s15   ;;  %s781_s14 = sphi %s842_s14, %s1144_s14   ;;  %s777_s13 = sphi %s840_s13, %s1151_s13   ;;  %s773_s12 = sphi %s838_s12, %s1150_s12  }
   0x9   : > { %1129 = sst [smem:[#allocation9_spill]] %s781_s14  ;;  %s31_s23 = sadd.s32 1, %s797_s18 }
   0xa   : > { %1130 = sst [smem:[#allocation10_spill]] %s797_s18  ;;  %p32_p0 = scmp.ge.s32.totalorder %s31_s23, 2 }
   0xb   : > { %1131 = sst [smem:[#allocation11_spill]] %s805_s20  ;;  %s34_s24 = sadd.s32 1, %s801_s19 }
   0xc   : > { %s539_s25 = sadd.s32 4294967294, %s809_s21   ;;  %p56_p1 = scmp.ne.s32.totalorder %s781_s14, %s777_s13 }
   0xd   : > { %s1155_s23 = smov (%p32_p0, %s31_s23), 0  ;;  %s1157_s24 = smov (!%p32_p0, %s34_s24), %s801_s19 }
   0xe   : > { %1132 = sst [smem:[#allocation12_spill]] %s1155_s23  ;;  %s38_s26 = sadd.s32 1, %s805_s20 }
   0xf   : > { %p57_p2 = scmp.eq.s32.totalorder %s809_s21, 0  ;;  %p36_p3 = scmp.ge.s32.totalorder %s1157_s24, 2 }
  0x10   : > { %p62_p4 = scmp.ne.s32.totalorder %s777_s13, %s773_s12  ;;  %p63_p6 = scmp.eq.s32.totalorder %s538_s22, 0 }
  0x11   : > { %p904_p5 = por %p57_p2, %p56_p1  ;;  %s1159_s24 = smov (%p36_p3, %s1157_s24), 0 }
  0x12   : > { %1134 = sst [smem:[#allocation13_spill]] %s1159_s24  ;;  %s1161_s26 = smov (!%p36_p3, %s38_s26), %s805_s20 }
  0x13   : > { %s45_s28 = ssub.s32 %s797_s18, %s1155_s23  ;;  %p916_p7 = por %p63_p6, %p62_p4 }
  0x14   : > { %p40_p8 = scmp.ge.s32.totalorder %s1161_s26, 2  ;;  %p142_p9 = scmp.eq.s32.totalorder %s538_s22, 7 }
  0x15   : > { %s42_s30 = ssub.s32 %s801_s19, %s1159_s24  ;;  %p148_p10 = scmp.eq.s32.totalorder %s539_s25, 7 }
  0x16   : > { %s1163_s26 = smov (%p40_p8, %s1161_s26), 0  ;;  %p927_p11 = por %p142_p9, %p56_p1 }
  0x17   : > { %1136 = sst [smem:[#allocation14_spill]] %s1163_s26  ;;  %p934_p12 = por %p148_p10, %p62_p4 }
  0x18   : > { %s43_s6 = ssub.s32 %s805_s20, %s1163_s26  ;;  %s49_s9 = sadd.s32 1, %s781_s14 }
  0x19   : > { %s1138_s5 = scalar_select %p934_p12, 1, 0 }
  0x1a   : > { %s44_s7 = sor.u32 %s43_s6, %s42_s30  ;;  %p541_p0 = scmp.ge.s32.totalorder %s809_s21, 8 }
  0x1b   : > { %1139 = sst [smem:[#allocation15_spill]] %s1138_s5  ;;  %s46_s8 = sor.u32 %s45_s28, %s44_s7 }
  0x1c   : > { %p47_p13 = scmp.eq.s32.totalorder %s46_s8, 0  ;;  %164 = sbr.rel (%p541_p0) target bundleno = 58 (0x3a), region = 16 }
  0x1e   : > { %s942_s10 = scalar_select %p47_p13, %s781_s14, %s49_s9  }
  0x20   : > { %1140 = sst [smem:[#allocation16_spill]] %s942_s10 }
  0x21   : > { %167 = sbr.rel (!%p904_p5) target bundleno = 58 (0x3a), region = 20  ;;  %s168_s11 = sand.u32 (%p904_p5), 1, %s781_s14  }
  0x22   : > { %s543_s22 = sshll.u32 (%p904_p5), %s797_s18, 2  ;;  %s542_s25 = sshll.u32 (%p904_p5), %s168_s11, 7 }
  0x23   : > { %s174_s24 = ssub.s32 (%p904_p5), 5, %s543_s22  ;;  %s955_s6 = scalar_lea.sflag (%p904_p5), [#allocation3], %s168_s11 }
  0x24   : > { %p175_p1 = scmp.lt.s32.totalorder (%p904_p5), %s174_s24, 4  ;;  %s172_s7 = scalar_lea.vmem (%p904_p5), [#allocation2], %s542_s25 }
  0x26   : > { %s1165_s24 = smov (!%p175_p1, %s174_s24), 4 }
  0x27   : > { %s952_s28 = sshll.u32 %s1165_s24, 9 }
  0x28   : > { %s179_s30 = ssub.s32 2048, %s952_s28 }
  0x29   : > { %180 = vsyncadd %s955_s6, %s179_s30  ;;  %p545_p2 = scmp.ne.s32.totalorder %s952_s28, 0  ;;  %s573_s27 = smul.u32 20, %s805_s20 }
  0x2a   : > { %s574_s8 = smul.u32 40, %s801_s19  ;;  %s547_s9 = sshll.u32 %s1165_s24, 3 }
  0x2b   : > { %s183_s26 = sadd.s32 %s573_s27, %s543_s22  ;;  %s190_s23 = sshll.u32 %s172_s7, 4  ;;  %s191_s23 = int_to_ptr.vmem [resolvable:$true] %s190_s23 }
  0x2c   : > { %s185_s18 = sadd.s32 %s574_s8, %s183_s26  ;;  %s683_s30 = scalar_lea.vmem %s191_s23, %s952_s28 }
  0x2d   : > { %s546_s10 = sshll.u32 %s185_s18, 7  ;;  %p684_p3 = scmp.ne.s32.totalorder %s191_s23, %s683_s30 }
  0x2e   : > { %s187_s25 = scalar_lea.hbm %s1116_s0, %s546_s10  ;;  %s811_s5 = smov [#allocation2]  }
  0x2f   : > { %p685_p4 = pnand %p684_p3, %p545_p2  ;;  %s687_s12 = sshll.u32 %s811_s5, 4  ;;  %s688_s12 = int_to_ptr.vmem [resolvable:$false] %s687_s12 }
  0x30   : > { %s689_s20 = scalar_lea.vmem %s688_s12, 4096  ;;  %p690_p6 = scmp.lt.s32.totalorder %s191_s23, %s688_s12 }
  0x31   : > { %p686_p5 = pneg %p685_p4  ;;  %p691_p8 = scmp.lt.s32.totalorder %s689_s20, %s683_s30 }
  0x33   : > { %p692_p9 = por %p691_p8, %p690_p6 }
  0x35   : > { %p693_p10 = pnand %p692_p9, %p686_p5 }
  0x37   : > { %696 = shalt.err (!%p693_p10)
}
  0x38   : > { %s812_s24 = smov 640   ;;  %s813_s14 = smov 512  }
  0x39   : > { %196 = dma.hbm_to_vmem [thread:$0]  (%p545_p2), %s187_s25, %s952_s28, %s191_s23, %s955_s6, %s812_s24, %s813_s14, %s547_s9  }
  0x3a PF: > { %p550_p13 = scmp.ge.s32.totalorder %s809_s21, 1  ;;  %p214_p0 = scmp.lt.s32.totalorder %s809_s21, 9 }
  0x3c   : > { %p215_p1 = pnand %p550_p13, %p214_p0 }
  0x3d   : > { %s975_s12 = sand.u32 (!%p215_p1), 1, %s777_s13  }
  0x3e   : > { %218 = sbr.rel (%p215_p1) target bundleno = 247 (0xf7), region = 32  ;;  %s551_s18 = sshll.u32 (!%p215_p1), %s975_s12, 7 }
  0x3f   : > { %s221_s20 = scalar_lea.sflag (!%p215_p1), [#allocation3], %s975_s12  ;;  %s981_s26 = scalar_lea.vmem (!%p215_p1), [#allocation2], %s551_s18 }
  0x43   : > { %764 = dma.done.wait (%p916_p7), %s221_s20, 2048  }
  0x44   : > { %766 = vsyncadd (%p916_p7), %s221_s20, 4294965248  ;;  %p262_p2 = scmp.lt.s32.totalorder %s793_s17, 1  ;;  %v814_v0 = vmov 0   ;;  %v277_v11 = vld [vmem:[%s981_s26] sm:$0xff]  ;;  %v282_v15 = vld [vmem:[%s981_s26 + $0x28] sm:$0xff]  ;;  %s1013_s27 = scalar_lea.vmem [#allocation5], %s551_s18 }
  0x45   : > { %670 = vset.pattern.permute.xlu1 %v814_v0  ;;  %669 = vset.pattern.permute.xlu0 %v814_v0  ;;  %v281_v12 = vld [vmem:[%s981_s26 + $0x20] sm:$0xff]  ;;  %v283_v16 = vld [vmem:[%s981_s26 + $0x30] sm:$0xff]  ;;  %v284_v17 = vld [vmem:[%s981_s26 + $0x38] sm:$0xff]  ;;  %s390_s8 = scalar_lea.sflag [#allocation4], %s975_s12  ;;  %s558_s9 = sshll.u32 (%p927_p11), %s785_s15, 2 }
  0x46   : > { %s263_s23 = scalar_select %p262_p2, %s793_s17, 1  ;;  %v278_v18 = vld [vmem:[%s981_s26 + $0x8] sm:$0xff]  ;;  %v279_v19 = vld [vmem:[%s981_s26 + $0x10] sm:$0xff]  ;;  %v280_v20 = vld [vmem:[%s981_s26 + $0x18] sm:$0xff] }
  0x47   : > { %v289_v25 = vld [vmem:[%s981_s26 + $0x60] sm:$0xff]  ;;  %v290_v26 = vld [vmem:[%s981_s26 + $0x68] sm:$0xff]  ;;  %v291_v33 = vld [vmem:[%s981_s26 + $0x70] sm:$0xff]  ;;  %s398_s11 = ssub.s32 (%p927_p11), 5, %s558_s9 }
  0x48   : > { %s569_s5 = sshll.u32 %s263_s23, 5  ;;  %v292_v34 = vld [vmem:[%s981_s26 + $0x78] sm:$0xff]  ;;  %v285_v35 = vld [vmem:[%s981_s26 + $0x40] sm:$0xff]  ;;  %v286_v40 = vld [vmem:[%s981_s26 + $0x48] sm:$0xff]  ;;  %p399_p7 = scmp.lt.s32.totalorder (%p927_p11), %s398_s11, 4 }
  0x49   : > { %s266_s28 = scalar_lea.vmem %s1117_s1, %s569_s5  ;;  %s271_s7 = scalar_lea.vmem %s1118_s2, %s569_s5  ;;  %v287_v41 = vld [vmem:[%s981_s26 + $0x50] sm:$0xff]  ;;  %v288_v42 = vld [vmem:[%s981_s26 + $0x58] sm:$0xff] }
  0x4a   : > { %v295_v1 = vld [vmem:[%s266_s28 + $0x10] sm:$0xff]  ;;  %v293_v2 = vld [vmem:[%s266_s28] sm:$0xff]  ;;  %v296_v3 = vld [vmem:[%s266_s28 + $0x18] sm:$0xff] }
  0x4b   : > { %309 = vperm.xlu1 %670, %v295_v1   ;;  %299 = vperm.xlu0 %669, %v293_v2   ;;  %v294_v4 = vld [vmem:[%s266_s28 + $0x8] sm:$0xff]  ;;  %v333_v6 = vld [vmem:[%s271_s7] sm:$0xff]  ;;  %v336_v7 = vld [vmem:[%s271_s7 + $0x18] sm:$0xff] }
  0x4c   : > { %v334_v5 = vld [vmem:[%s271_s7 + $0x8] sm:$0xff]  ;;  %v335_v8 = vld [vmem:[%s271_s7 + $0x10] sm:$0xff] }
  0x4f   : > { %314 = vperm.xlu1 %670, %v296_v3   ;;  %304 = vperm.xlu0 %669, %v294_v4  }
  0x53   : > { %344 = vperm.xlu1 %670, %v334_v5   ;;  %339 = vperm.xlu0 %669, %v333_v6  }
  0x57   : > { %354 = vperm.xlu1 %670, %v336_v7   ;;  %349 = vperm.xlu0 %669, %v335_v8  }
  0xc6   : > { %v310_v9 = vpop.permute.xlu1 %309  ;;  %v300_v10 = vpop.permute.xlu0 %299 }
  0xc7   : > { %v317_v27 = vmul.f32 %v300_v10, %v277_v11  ;;  %v318_v28 = vmul.f32 %v300_v10, %v278_v18  ;;  %v319_v29 = vmul.f32 %v300_v10, %v279_v19  ;;  %v320_v30 = vmul.f32 %v300_v10, %v280_v20 }
  0xc8   : > { %v325_v53 = vmul.f32 %v310_v9, %v285_v35  ;;  %v326_v54 = vmul.f32 %v310_v9, %v286_v40  ;;  %v327_v55 = vmul.f32 %v310_v9, %v287_v41  ;;  %v328_v56 = vmul.f32 %v310_v9, %v288_v42 }
  0xca   : > { %v315_v13 = vpop.permute.xlu1 %314  ;;  %v305_v14 = vpop.permute.xlu0 %304 }
  0xcb   : > { %v321_v21 = vmul.f32 %v305_v14, %v281_v12  ;;  %v322_v22 = vmul.f32 %v305_v14, %v282_v15  ;;  %v323_v23 = vmul.f32 %v305_v14, %v283_v16  ;;  %v324_v24 = vmul.f32 %v305_v14, %v284_v17 }
  0xcc   : > { %v329_v47 = vmul.f32 %v315_v13, %v289_v25  ;;  %v330_v48 = vmul.f32 %v315_v13, %v290_v26  ;;  %v331_v49 = vmul.f32 %v315_v13, %v291_v33  ;;  %v332_v50 = vmul.f32 %v315_v13, %v292_v34 }
  0xce   : > { %v345_v31 = vpop.permute.xlu1 %344  ;;  %v340_v32 = vpop.permute.xlu0 %339 }
  0xcf   : > { %v361_v36 = vadd.f32 %v345_v31, %v321_v21  ;;  %v362_v37 = vadd.f32 %v345_v31, %v322_v22  ;;  %v363_v38 = vadd.f32 %v345_v31, %v323_v23  ;;  %v364_v39 = vadd.f32 %v345_v31, %v324_v24 }
  0xd0   : > { %v357_v43 = vadd.f32 %v340_v32, %v317_v27  ;;  %v358_v44 = vadd.f32 %v340_v32, %v318_v28  ;;  %v359_v45 = vadd.f32 %v340_v32, %v319_v29  ;;  %v360_v46 = vadd.f32 %v340_v32, %v320_v30 }
  0xd1   : > { %377 = vst [vmem:[%s1013_s27 + $0x20] sm:$0xff] %v361_v36  ;;  %378 = vst [vmem:[%s1013_s27 + $0x28] sm:$0xff] %v362_v37 }
  0xd2   : > { %379 = vst [vmem:[%s1013_s27 + $0x30] sm:$0xff] %v363_v38  ;;  %380 = vst [vmem:[%s1013_s27 + $0x38] sm:$0xff] %v364_v39  ;;  %v355_v51 = vpop.permute.xlu1 %354  ;;  %v350_v52 = vpop.permute.xlu0 %349 }
  0xd3   : > { %373 = vst [vmem:[%s1013_s27] sm:$0xff] %v357_v43  ;;  %374 = vst [vmem:[%s1013_s27 + $0x8] sm:$0xff] %v358_v44  ;;  %v369_v57 = vadd.f32 %v355_v51, %v329_v47  ;;  %v370_v58 = vadd.f32 %v355_v51, %v330_v48  ;;  %v371_v59 = vadd.f32 %v355_v51, %v331_v49 }
  0xd4   : > { %375 = vst [vmem:[%s1013_s27 + $0x10] sm:$0xff] %v359_v45  ;;  %376 = vst [vmem:[%s1013_s27 + $0x18] sm:$0xff] %v360_v46  ;;  %v372_v60 = vadd.f32 %v355_v51, %v332_v50  ;;  %v365_v61 = vadd.f32 %v350_v52, %v325_v53  ;;  %v366_v62 = vadd.f32 %v350_v52, %v326_v54  ;;  %396 = sbr.rel (!%p927_p11) target bundleno = 247 (0xf7), region = 40 }
  0xd5   : > { %v367_v63 = vadd.f32 %v350_v52, %v327_v55  ;;  %v368_v0 = vadd.f32 %v350_v52, %v328_v56  ;;  %385 = vst [vmem:[%s1013_s27 + $0x60] sm:$0xff] %v369_v57  ;;  %386 = vst [vmem:[%s1013_s27 + $0x68] sm:$0xff] %v370_v58 }
  0xd6   : > { %387 = vst [vmem:[%s1013_s27 + $0x70] sm:$0xff] %v371_v59  ;;  %388 = vst [vmem:[%s1013_s27 + $0x78] sm:$0xff] %v372_v60 }
  0xd7   : > { %381 = vst [vmem:[%s1013_s27 + $0x40] sm:$0xff] %v365_v61  ;;  %382 = vst [vmem:[%s1013_s27 + $0x48] sm:$0xff] %v366_v62 }
  0xd8   : > { %383 = vst [vmem:[%s1013_s27 + $0x50] sm:$0xff] %v367_v63  ;;  %384 = vst [vmem:[%s1013_s27 + $0x58] sm:$0xff] %v368_v0 }
  0xd9   : > { %s1167_s11 = smov (!%p399_p7, %s398_s11), 4 }
  0xda   : > { %s1038_s25 = sshll.u32 %s1167_s11, 9 }
  0xdb   : > { %s403_s30 = ssub.s32 2048, %s1038_s25 }
  0xdc   : > { %404 = vsyncadd %s390_s8, %s403_s30  ;;  %p560_p11 = scmp.ne.s32.totalorder %s1038_s25, 0  ;;  %s575_s15 = smul.u32 20, %s793_s17 }
  0xdd   : > { %s576_s4 = smul.u32 40, %s789_s16  ;;  %s562_s24 = sshll.u32 %s1167_s11, 3 }
  0xde   : > { %s407_s14 = sadd.s32 %s575_s15, %s558_s9  ;;  %s414_s18 = sshll.u32 %s1013_s27, 4  ;;  %s1048_s18 = int_to_ptr.vmem [resolvable:$true] %s414_s18 }
  0xdf   : > { %s409_s20 = sadd.s32 %s576_s4, %s407_s14  ;;  %s697_s22 = scalar_lea.vmem %s1048_s18, %s1038_s25 }
  0xe0   : > { %s561_s26 = sshll.u32 %s409_s20, 7  ;;  %p698_p3 = scmp.ne.s32.totalorder %s1048_s18, %s697_s22 }
  0xe1   : > { %s1053_s10 = scalar_lea.hbm %s1119_s3, %s561_s26  ;;  %s815_s16 = smov [#allocation5]  }
  0xe2   : > { %p699_p4 = pnand %p698_p3, %p560_p11  ;;  %s701_s17 = sshll.u32 %s815_s16, 4  ;;  %s702_s17 = int_to_ptr.vmem [resolvable:$false] %s701_s17 }
  0xe3   : > { %s703_s28 = scalar_lea.vmem %s702_s17, 4096  ;;  %p704_p6 = scmp.lt.s32.totalorder %s1048_s18, %s702_s17 }
  0xe4   : > { %p700_p5 = pneg %p699_p4  ;;  %p705_p8 = scmp.lt.s32.totalorder %s703_s28, %s697_s22 }
  0xe6   : > { %p706_p9 = por %p705_p8, %p704_p6 }
  0xe8   : > { %p707_p10 = pnand %p706_p9, %p700_p5 }
  0xea   : > { %710 = shalt.err (!%p707_p10)
}
  0xeb   : > { %s711_s29 = scalar_lea.hbm %s1053_s10, %s1038_s25  ;;  %s715_s27 = scalar_lea.hbm %s1119_s3, 10240 }
  0xec   : > { %p712_p13 = scmp.ne.s32.totalorder %s1053_s10, %s711_s29  ;;  %p716_p2 = scmp.lt.s32.totalorder %s1053_s10, %s1119_s3 }
  0xed   : > { %p717_p7 = scmp.lt.s32.totalorder %s715_s27, %s711_s29 }
  0xee   : > { %p713_p0 = pnand %p712_p13, %p560_p11 }
  0xef   : > { %p718_p3 = por %p717_p7, %p716_p2 }
  0xf0   : > { %p714_p1 = pneg %p713_p0 }
  0xf2   : > { %p719_p4 = pnand %p718_p3, %p714_p1 }
  0xf4   : > { %722 = shalt.err (!%p719_p4)
}
  0xf5   : > { %s816_s15 = smov 512   ;;  %s817_s4 = smov 640  }
  0xf6   : > { %420 = dma.vmem_to_hbm [thread:$0]  (%p560_p11), %s1048_s18, %s1038_s25, %s1053_s10, %s390_s8, %s816_s15, %s817_s4, %s562_s24  }
  0xf7 PF: > { %s1141_s14 = sld [smem:[#allocation8_spill]]  ;;  %p583_p5 = scmp.ge.s32.totalorder %s809_s21, 2 }
  0xf9   : > { %p580_p6 = pnand %p583_p5, %p934_p12 }
  0xfb   : > { %p581_p8 = pneg %p580_p6 }
  0xfd   : > { %s429_s26 = sand.u32 1, %s1141_s14  }
  0xfe   : > { %s430_s23 = scalar_lea.sflag [#allocation4], %s429_s26 }
  0xff   : > { %768 = dma.done.wait (%p581_p8), %s430_s23, 2048  }
 0x100   : > { %770 = vsyncadd (%p581_p8), %s430_s23, 4294965248  ;;  %s19_s21 = sadd.s32 1, %s809_s21   ;;  %s1143_s11 = sld [smem:[#allocation9_spill]] }
 0x101   : > { %p16_p9 = scmp.ge.s32.totalorder %s19_s21, 10   ;;  %s1144_s14 = sld [smem:[#allocation16_spill]] }
 0x102   : > { %s1145_s15 = sld [smem:[#allocation10_spill]]  ;;  %s1150_s12 = smov %s777_s13 }
 0x103   : > { %s1146_s17 = sld [smem:[#allocation11_spill]]  ;;  %s1152_s16 = smov %s801_s19 }
 0x104   : > { %s1147_s18 = sld [smem:[#allocation12_spill]] }
 0x105   : > { %s1148_s8 = sld [smem:[#allocation13_spill]] }
 0x106   : > { %s1149_s20 = sld [smem:[#allocation14_spill]]  ;;  %s1151_s13 = smov %s1143_s11 }
 0x107   :  { %18 = sbr.rel (!%p16_p9) target bundleno = 8 (0x8), region = 83 }
 0x10b   : > { %s1153_s19 = smov %s1148_s8 }
 0x10c   :  { %435 = vsyncpa [#allocation3], 1 }
 0x10d   :  { %437 = vsyncpa [#allocation3 + $0x1], 1 }
 0x10e   :  { %438 = vsyncpa [#allocation4], 1 }
 0x10f   :  { %440 = vsyncpa [#allocation4 + $0x1], 1 }

</bundles_post_ra>
